<compile_context>
chip_gen: v7x
topology: tpu7x:2x2x1
jax: 0.10.0
libtpu: 0.0.40
codegen_flags: <defaults>
</compile_context>

<pallas_src>
import functools

import jax
import jax.numpy as jnp
from jax.experimental import pallas as pl
from jax.experimental.pallas import tpu as pltpu

_LN_EPS = 1e-12                    # HF ViT layer_norm_eps
_SQRT_HALF = 0.7071067811865476
_VMEM_LIMIT = 48 * 1024 * 1024     # fits v7x (64 MiB); raise on v5e/v6e (128 MiB)


# ----------------------------- in-kernel helpers -----------------------------

def _layernorm(x, g, b, eps=_LN_EPS):
    """f32 LayerNorm over the last dim; g/b are (1, H)."""
    mu = jnp.mean(x, axis=-1, keepdims=True)
    var = jnp.mean(jnp.square(x - mu), axis=-1, keepdims=True)
    return (x - mu) * jax.lax.rsqrt(var + eps) * g + b


def _erf(x):
    # erf via Abramowitz & Stegun 7.1.26 (|error| < 1.5e-7): matches HF ViT's
    # exact erf-GELU at f32 precision using only exp/mul/add/div.
    a1, a2, a3, a4, a5 = (0.254829592, -0.284496736, 1.421413741,
                          -1.453152027, 1.061405429)
    z = jnp.abs(x)
    t = 1.0 / (1.0 + 0.3275911 * z)
    poly = ((((a5 * t + a4) * t + a3) * t + a2) * t + a1) * t
    y = 1.0 - poly * jnp.exp(-z * z)
    return jnp.where(x >= 0, y, -y)


def _gelu_exact(x):
    return 0.5 * x * (1.0 + _erf(x * _SQRT_HALF))


def _mm(a, b):
    """bf16 MXU matmul with f32 accumulation."""
    return jnp.dot(a.astype(jnp.bfloat16), b.astype(jnp.bfloat16),
                   preferred_element_type=jnp.float32)


def _cparams(sem):
    return pltpu.CompilerParams(dimension_semantics=sem,
                                vmem_limit_bytes=_VMEM_LIMIT)


# ----------------------------- Pallas kernels -----------------------------

def _embed_kernel(px_ref, w_ref, bias_ref, o_ref):
    # px_ref : (1, nP, K) f32 patches (no CLS padding row)
    # w_ref  : (K, H)     bf16 flattened conv weight
    # bias   : (1, S, H)  f32; row 0 = cls_token + pos[0], rows 1: = conv_b + pos[1:]
    x = _mm(px_ref[0], w_ref[...])                   # (nP, H) f32
    o_ref[0, 0:1, :] = bias_ref[0, 0:1, :]           # CLS row is a pure bias write
    o_ref[0, 1:, :] = x + bias_ref[0, 1:, :]


def _layer_kernel(num_heads, eps,
                  x_ref, ln1g_ref, ln1b_ref,
                  wq_ref, bq_ref, wk_ref, bk_ref, wv_ref, bv_ref,
                  wo_ref, bo_ref, ln2g_ref, ln2b_ref,
                  w1_ref, b1_ref, w2_ref, b2_ref,
                  o_ref, x_sc):
    """One grid step = one (image b, layer l). x stays resident in VMEM scratch."""
    l = pl.program_id(1)

    @pl.when(l == 0)
    def _():
        x_sc[...] = x_ref[0]                         # load activation once per image

    x = x_sc[...]                                    # (S, H) f32
    S, H = x.shape
    D = wq_ref.shape[-1]
    scale = 1.0 / (float(D) ** 0.5)

    # ---- attention block (pre-LN), per-head accumulation into the out-proj ----
    xn = _layernorm(x, ln1g_ref[0], ln1b_ref[0], eps)
    attn = jnp.zeros((S, H), jnp.float32)
    for h in range(num_heads):                       # static unroll over heads
        qh = _mm(xn, wq_ref[0, h]) + bq_ref[0, h]    # (S, D) — pre-split weight
        kh = _mm(xn, wk_ref[0, h]) + bk_ref[0, h]    # slabs: no lane-offset slices
        vh = _mm(xn, wv_ref[0, h]) + bv_ref[0, h]
        s = jax.lax.dot_general(qh.astype(jnp.bfloat16), kh.astype(jnp.bfloat16),
                                (((1,), (1,)), ((), ())),
                                preferred_element_type=jnp.float32) * scale
        s = s - jnp.max(s, axis=-1, keepdims=True)
        p = jnp.exp(s)
        p = p * pl.reciprocal(jnp.sum(p, axis=-1, keepdims=True), approx=True)
        # per-head contribution straight into the (S, H) accumulator — no concat
        attn = attn + _mm(_mm(p, vh), wo_ref[0, h])
    x = x + attn + bo_ref[0]                         # residual 1

    # ---- MLP block (pre-LN) ----
    hn = _layernorm(x, ln2g_ref[0], ln2b_ref[0], eps)
    h1 = _gelu_exact(_mm(hn, w1_ref[0]) + b1_ref[0])
    x = x + _mm(h1, w2_ref[0]) + b2_ref[0]           # residual 2

    x_sc[...] = x

    @pl.when(l == pl.num_programs(1) - 1)
    def _():
        o_ref[0] = x                                 # write back only once per image


def _pool_kernel(eps, inv_count, x_ref, g_ref, b_ref, o_ref):
    # Final encoder LayerNorm fused with mean pooling over patch tokens
    # (excluding CLS): sum all rows, subtract row 0, scale by 1/(S-1).
    xn = _layernorm(x_ref[0], g_ref[...], b_ref[...], eps)    # (S, H)
    total = jnp.sum(xn, axis=0, keepdims=True)                # (1, H)
    o_ref[0] = (total - xn[0:1, :]) * inv_count


# ----------------------------- pallas_call wrappers -----------------------------

def patch_embed(patches, patch_w, embed_bias):
    B, nP, K = patches.shape
    S, H = embed_bias.shape[1], embed_bias.shape[2]
    return pl.pallas_call(
        _embed_kernel,
        out_shape=jax.ShapeDtypeStruct((B, S, H), jnp.float32),
        grid=(B,),
        in_specs=[pl.BlockSpec((1, nP, K), lambda i: (i, 0, 0)),
                  pl.BlockSpec((K, H), lambda i: (0, 0)),
                  pl.BlockSpec((1, S, H), lambda i: (0, 0, 0))],
        out_specs=pl.BlockSpec((1, S, H), lambda i: (i, 0, 0)),
        compiler_params=_cparams(("parallel",)),
    )(patches, patch_w, embed_bias)


def vit_layers(x, p, num_heads, eps=_LN_EPS):
    """Whole transformer stack in one pallas_call: grid = (batch, layer)."""
    B, S, H = x.shape
    L, NH, _, D = p["wq"].shape
    MLP = p["w1"].shape[-1]

    def wspec(shape):
        # Weight blocks indexed by the layer grid axis only (constant across b),
        # so the pipeline prefetches layer l+1 while layer l computes.
        return pl.BlockSpec(shape, lambda b, l, _n=len(shape): (l,) + (0,) * (_n - 1))

    x_spec = pl.BlockSpec((1, S, H), lambda b, l: (b, 0, 0))   # constant across l

    return pl.pallas_call(
        functools.partial(_layer_kernel, num_heads, eps),
        out_shape=jax.ShapeDtypeStruct((B, S, H), jnp.float32),
        grid=(B, L),
        in_specs=[
            x_spec,
            wspec((1, 1, H)), wspec((1, 1, H)),          # LN1 gamma/beta
            wspec((1, NH, H, D)), wspec((1, NH, 1, D)),  # per-head Q weight/bias
            wspec((1, NH, H, D)), wspec((1, NH, 1, D)),  # per-head K weight/bias
            wspec((1, NH, H, D)), wspec((1, NH, 1, D)),  # per-head V weight/bias
            wspec((1, NH, D, H)), wspec((1, 1, H)),      # per-head out-proj, bias
            wspec((1, 1, H)), wspec((1, 1, H)),          # LN2 gamma/beta
            wspec((1, H, MLP)), wspec((1, 1, MLP)),      # MLP up
            wspec((1, MLP, H)), wspec((1, 1, H)),        # MLP down
        ],
        out_specs=x_spec,
        scratch_shapes=[pltpu.VMEM((S, H), jnp.float32)],       # resident activation
        compiler_params=_cparams(("parallel", "arbitrary")),
    )(x, p["ln1_g"], p["ln1_b"],
      p["wq"], p["bq"], p["wk"], p["bk"], p["wv"], p["bv"],
      p["wo"], p["bo"], p["ln2_g"], p["ln2_b"],
      p["w1"], p["b1"], p["w2"], p["b2"])


def final_ln_mean_pool(x, g, b, eps=_LN_EPS):
    B, S, H = x.shape
    out = pl.pallas_call(
        functools.partial(_pool_kernel, eps, 1.0 / float(S - 1)),
        out_shape=jax.ShapeDtypeStruct((B, 1, H), jnp.float32),
        grid=(B,),
        in_specs=[pl.BlockSpec((1, S, H), lambda i: (i, 0, 0)),
                  pl.BlockSpec((1, H), lambda i: (0, 0)),
                  pl.BlockSpec((1, H), lambda i: (0, 0))],
        out_specs=pl.BlockSpec((1, 1, H), lambda i: (i, 0, 0)),
        compiler_params=_cparams(("parallel",)),
    )(x, g, b)
    return out.reshape(B, H)


# ----------------------------- Model forward -----------------------------

def vit_embedder_forward(params, pixel_values, cfg):
    B, C, Hi, Wi = pixel_values.shape
    P, NH = cfg["patch"], cfg["heads"]
    gh, gw = Hi // P, Wi // P
    nP = gh * gw

    # Patch extraction for a conv with kernel=stride=P is pure layout plumbing.
    # TODO(synk): at production shapes this reshape/transpose could be replaced by
    # an in-kernel DMA over the patch grid; kept as XLA glue here.
    patches = pixel_values.reshape(B, C, gh, P, gw, P)
    patches = patches.transpose(0, 2, 4, 1, 3, 5).reshape(B, nP, C * P * P)

    x = patch_embed(patches, params["patch_w"], params["embed_bias"])
    x = vit_layers(x, params, NH)
    # ViTModel final layernorm -> last_hidden_state, then mean over patch tokens.
    return final_ln_mean_pool(x, params["lnf_g"], params["lnf_b"])


# ----------------------------- Parameter init -----------------------------

def init_params(key, cfg):
    C, P, H, MLP, L, NH, S = (cfg["channels"], cfg["patch"], cfg["hidden"],
                              cfg["mlp"], cfg["layers"], cfg["heads"], cfg["seq"])
    D = H // NH
    nP = S - 1
    K = C * P * P

    def wgt(k, shape):   # MXU weights stored bf16 (frozen inference embedder)
        return (0.02 * jax.random.normal(k, shape, jnp.float32)).astype(jnp.bfloat16)

    def bias(k, shape):  # biases / LN params stay f32
        return 0.02 * jax.random.normal(k, shape, jnp.float32)

    ks = jax.random.split(key, 16)
    # TODO(synk): a real HF conv weight (H, C, P, P) must be flattened as
    # weight.reshape(H, C*P*P).T to produce patch_w of shape (K, H); HF q/k/v
    # (H, H) weights map to (NH, H, D) via weight.T.reshape(H, NH, D).transpose(1,0,2)
    # and the attention output weight to (NH, D, H) via weight.T.reshape(NH, D, H).
    patch_w = wgt(ks[0], (K, H))
    patch_b = bias(ks[1], (1, 1, H))
    cls = 0.02 * jax.random.normal(ks[2], (1, 1, H), jnp.float32)
    pos = 0.02 * jax.random.normal(ks[3], (1, S, H), jnp.float32)
    # Fused per-token embedding bias (precomputed once for the frozen model):
    #   row 0   -> cls token + pos[0]      (conv bias does not apply to CLS)
    #   row 1.. -> conv bias + pos[1:]
    embed_bias = jnp.concatenate(
        [cls, jnp.broadcast_to(patch_b, (1, nP, H))], axis=1) + pos

    return dict(
        patch_w=patch_w, embed_bias=embed_bias,
        lnf_g=jnp.ones((1, H), jnp.float32), lnf_b=jnp.zeros((1, H), jnp.float32),
        ln1_g=jnp.ones((L, 1, H), jnp.float32), ln1_b=jnp.zeros((L, 1, H), jnp.float32),
        ln2_g=jnp.ones((L, 1, H), jnp.float32), ln2_b=jnp.zeros((L, 1, H), jnp.float32),
        wq=wgt(ks[4], (L, NH, H, D)), bq=bias(ks[5], (L, NH, 1, D)),
        wk=wgt(ks[6], (L, NH, H, D)), bk=bias(ks[7], (L, NH, 1, D)),
        wv=wgt(ks[8], (L, NH, H, D)), bv=bias(ks[9], (L, NH, 1, D)),
        wo=wgt(ks[10], (L, NH, D, H)), bo=bias(ks[11], (L, 1, H)),
        w1=wgt(ks[12], (L, H, MLP)), b1=bias(ks[13], (L, 1, MLP)),
        w2=wgt(ks[14], (L, MLP, H)), b2=bias(ks[15], (L, 1, H)),
    )


# ----------------------------- Pure-JAX reference (tolerance check) -----------------------------

def _reference_forward(params, pixel_values, cfg):
    f32 = jnp.float32
    B, C, Hi, Wi = pixel_values.shape
    P = cfg["patch"]
    gh, gw = Hi // P, Wi // P
    patches = pixel_values.reshape(B, C, gh, P, gw, P)
    patches = patches.transpose(0, 2, 4, 1, 3, 5).reshape(B, gh * gw, -1)
    x = patches @ params["patch_w"].astype(f32)
    x = jnp.pad(x, ((0, 0), (1, 0), (0, 0))) + params["embed_bias"]

    def ln(v, g, b):
        mu = v.mean(-1, keepdims=True)
        var = jnp.square(v - mu).mean(-1, keepdims=True)
        return (v - mu) * jax.lax.rsqrt(var + _LN_EPS) * g + b

    L, NH, _, D = params["wq"].shape
    for l in range(L):
        xn = ln(x, params["ln1_g"][l], params["ln1_b"][l])
        q = jnp.einsum("bsh,nhd->bnsd", xn, params["wq"][l].astype(f32)) + params["bq"][l]
        k = jnp.einsum("bsh,nhd->bnsd", xn, params["wk"][l].astype(f32)) + params["bk"][l]
        v = jnp.einsum("bsh,nhd->bnsd", xn, params["wv"][l].astype(f32)) + params["bv"][l]
        s = jnp.einsum("bnqd,bnkd->bnqk", q, k) / (float(D) ** 0.5)
        p = jax.nn.softmax(s, axis=-1)
        ctx = jnp.einsum("bnqk,bnkd->bnqd", p, v)
        attn = jnp.einsum("bnqd,ndh->bqh", ctx, params["wo"][l].astype(f32)) + params["bo"][l]
        x = x + attn
        hn = ln(x, params["ln2_g"][l], params["ln2_b"][l])
        h1 = jax.nn.gelu(hn @ params["w1"][l].astype(f32) + params["b1"][l], approximate=False)
        x = x + h1 @ params["w2"][l].astype(f32) + params["b2"][l]

    xn = ln(x, params["lnf_g"], params["lnf_b"])
    return xn[:, 1:, :].mean(axis=1)


if __name__ == "__main__":
    # Small synthetic ViT config (structure of vit_base, scaled down).
    cfg = dict(channels=3, image=16, patch=8, hidden=32, heads=2, mlp=64, layers=2)
    cfg["seq"] = (cfg["image"] // cfg["patch"]) ** 2 + 1   # 4 patches + CLS = 5

    key = jax.random.PRNGKey(0)
    kp, kx = jax.random.split(key)
    params = init_params(kp, cfg)
    pixel_values = jax.random.normal(
        kx, (2, cfg["channels"], cfg["image"], cfg["image"]), jnp.float32)

    fwd = jax.jit(functools.partial(vit_embedder_forward, cfg=cfg))
    out = jax.block_until_ready(fwd(params, pixel_values))
    assert out.shape == (2, cfg["hidden"])
    assert bool(jnp.all(jnp.isfinite(out)))

    # Loose tolerance vs an f32 JAX reference (bf16 MXU inputs, approx reciprocal,
    # A&S erf all introduce small, expected deviations).
    ref = jax.block_until_ready(_reference_forward(params, pixel_values, cfg))
    max_err = float(jnp.max(jnp.abs(out - ref)))
    assert max_err < 5e-2, f"max abs err {max_err}"
    print("KERNEL_OK")
</pallas_src>

<mosaic_0001>
module attributes {stable_mosaic.version = 11 : i64} {
  func.func @_embed_kernel(%arg0: i32, %arg1: memref<1x4x192xf32, #tpu.memory_space<vmem>>, %arg2: memref<192x32xbf16, #tpu.memory_space<vmem>>, %arg3: memref<1x5x32xf32, #tpu.memory_space<vmem>>, %arg4: memref<1x5x32xf32, #tpu.memory_space<vmem>>) attributes {dimension_semantics = [#tpu.dimension_semantics<parallel>], iteration_bounds = array<i64: 2>, scalar_prefetch = 0 : i64, scratch_operands = 0 : i64, tpu.core_type = #tpu.core_type<tc>, window_params = [{transform_indices = @transform_0, window_bounds = array<i64: 1, 4, 192>}, {pipeline_mode = #tpu.pipeline_mode<synchronous>, transform_indices = @transform_1, window_bounds = array<i64: 192, 32>}, {pipeline_mode = #tpu.pipeline_mode<synchronous>, transform_indices = @transform_2, window_bounds = array<i64: 1, 5, 32>}, {transform_indices = @transform_3, window_bounds = array<i64: 1, 5, 32>}]} {
    %c0 = arith.constant 0 : index
    %c0_0 = arith.constant 0 : index
    %c0_1 = arith.constant 0 : index
    %0 = vector.load %arg1[%c0, %c0_0, %c0_1] : memref<1x4x192xf32, #tpu.memory_space<vmem>>, vector<1x4x192xf32>
    %1 = vector.shape_cast %0 : vector<1x4x192xf32> to vector<4x192xf32>
    %c0_2 = arith.constant 0 : index
    %c0_3 = arith.constant 0 : index
    %2 = vector.load %arg2[%c0_2, %c0_3] : memref<192x32xbf16, #tpu.memory_space<vmem>>, vector<192x32xbf16>
    %3 = arith.truncf %1 : vector<4x192xf32> to vector<4x192xbf16>
    %cst = arith.constant dense<0.000000e+00> : vector<4x32xf32>
    %4 = tpu.matmul %3, %2, %cst {dimension_numbers = #tpu.dot_dimension_numbers<[1], [0], [0], [1], [0, 0, 1, 1], [], []>} : vector<4x192xbf16>, vector<192x32xbf16>, vector<4x32xf32> -> vector<4x32xf32>
    %c0_4 = arith.constant 0 : index
    %c0_5 = arith.constant 0 : index
    %c0_6 = arith.constant 0 : index
    %5 = vector.load %arg3[%c0_4, %c0_5, %c0_6] : memref<1x5x32xf32, #tpu.memory_space<vmem>>, vector<1x1x32xf32>
    %6 = vector.shape_cast %5 : vector<1x1x32xf32> to vector<1x32xf32>
    %c0_7 = arith.constant 0 : index
    %c0_8 = arith.constant 0 : index
    %c0_9 = arith.constant 0 : index
    %7 = vector.load %arg4[%c0_7, %c0_8, %c0_9] : memref<1x5x32xf32, #tpu.memory_space<vmem>>, vector<1x1x32xf32>
    %8 = vector.shape_cast %7 : vector<1x1x32xf32> to vector<1x32xf32>
    %9 = vector.shape_cast %6 : vector<1x32xf32> to vector<1x1x32xf32>
    tpu.vector_store %arg4[%c0_7, %c0_8, %c0_9], %9 {strides = array<i32>} : memref<1x5x32xf32, #tpu.memory_space<vmem>>, vector<1x1x32xf32>,
    %c0_10 = arith.constant 0 : index
    %c1 = arith.constant 1 : index
    %c0_11 = arith.constant 0 : index
    %10 = vector.load %arg3[%c0_10, %c1, %c0_11] : memref<1x5x32xf32, #tpu.memory_space<vmem>>, vector<1x4x32xf32>
    %11 = vector.shape_cast %10 : vector<1x4x32xf32> to vector<4x32xf32>
    %12 = arith.addf %4, %11 : vector<4x32xf32>
    %c0_12 = arith.constant 0 : index
    %c1_13 = arith.constant 1 : index
    %c0_14 = arith.constant 0 : index
    %13 = vector.load %arg4[%c0_12, %c1_13, %c0_14] : memref<1x5x32xf32, #tpu.memory_space<vmem>>, vector<1x4x32xf32>
    %14 = vector.shape_cast %13 : vector<1x4x32xf32> to vector<4x32xf32>
    %15 = vector.shape_cast %12 : vector<4x32xf32> to vector<1x4x32xf32>
    tpu.vector_store %arg4[%c0_12, %c1_13, %c0_14], %15 {strides = array<i32>} : memref<1x5x32xf32, #tpu.memory_space<vmem>>, vector<1x4x32xf32>,
    return
  }
  func.func @transform_0(%arg0: i32) -> (i32, i32, i32) {
    %c0_i32 = arith.constant 0 : i32
    %c0_i32_0 = arith.constant 0 : i32
    %c0_i32_1 = arith.constant 0 : i32
    return %arg0, %c0_i32, %c0_i32_0 : i32, i32, i32
  }
  func.func @transform_1(%arg0: i32) -> (i32, i32) {
    %c0_i32 = arith.constant 0 : i32
    %c0_i32_0 = arith.constant 0 : i32
    %c0_i32_1 = arith.constant 0 : i32
    return %c0_i32, %c0_i32_0 : i32, i32
  }
  func.func @transform_2(%arg0: i32) -> (i32, i32, i32) {
    %c0_i32 = arith.constant 0 : i32
    %c0_i32_0 = arith.constant 0 : i32
    %c0_i32_1 = arith.constant 0 : i32
    %c0_i32_2 = arith.constant 0 : i32
    return %c0_i32, %c0_i32_0, %c0_i32_1 : i32, i32, i32
  }
  func.func @transform_3(%arg0: i32) -> (i32, i32, i32) {
    %c0_i32 = arith.constant 0 : i32
    %c0_i32_0 = arith.constant 0 : i32
    %c0_i32_1 = arith.constant 0 : i32
    return %arg0, %c0_i32, %c0_i32_0 : i32, i32, i32
  }
}

module attributes {stable_mosaic.version = 11 : i64} {
  func.func @_pool_kernel(%arg0: i32, %arg1: memref<1x5x32xf32, #tpu.memory_space<vmem>>, %arg2: memref<1x32xf32, #tpu.memory_space<vmem>>, %arg3: memref<1x32xf32, #tpu.memory_space<vmem>>, %arg4: memref<1x1x32xf32, #tpu.memory_space<vmem>>) attributes {dimension_semantics = [#tpu.dimension_semantics<parallel>], iteration_bounds = array<i64: 2>, scalar_prefetch = 0 : i64, scratch_operands = 0 : i64, tpu.core_type = #tpu.core_type<tc>, window_params = [{transform_indices = @transform_0, window_bounds = array<i64: 1, 5, 32>}, {pipeline_mode = #tpu.pipeline_mode<synchronous>, transform_indices = @transform_1, window_bounds = array<i64: 1, 32>}, {pipeline_mode = #tpu.pipeline_mode<synchronous>, transform_indices = @transform_2, window_bounds = array<i64: 1, 32>}, {transform_indices = @transform_3, window_bounds = array<i64: 1, 1, 32>}]} {
    %c0 = arith.constant 0 : index
    %c0_0 = arith.constant 0 : index
    %c0_1 = arith.constant 0 : index
    %0 = vector.load %arg1[%c0, %c0_0, %c0_1] : memref<1x5x32xf32, #tpu.memory_space<vmem>>, vector<1x5x32xf32>
    %1 = vector.shape_cast %0 : vector<1x5x32xf32> to vector<5x32xf32>
    %c0_2 = arith.constant 0 : index
    %c0_3 = arith.constant 0 : index
    %2 = vector.load %arg2[%c0_2, %c0_3] : memref<1x32xf32, #tpu.memory_space<vmem>>, vector<1x32xf32>
    %c0_4 = arith.constant 0 : index
    %c0_5 = arith.constant 0 : index
    %3 = vector.load %arg3[%c0_4, %c0_5] : memref<1x32xf32, #tpu.memory_space<vmem>>, vector<1x32xf32>
    %cst = arith.constant dense<0.000000e+00> : vector<5xf32>
    %4 = vector.multi_reduction <add>, %1, %cst [1] : vector<5x32xf32> to vector<5xf32>
    %5 = vector.shape_cast %4 : vector<5xf32> to vector<5x1xf32>
    %cst_6 = arith.constant 3.200000e+01 : f32
    %6 = vector.broadcast %cst_6 : f32 to vector<5x1xf32>
    %7 = arith.divf %5, %6 : vector<5x1xf32>
    %8 = vector.broadcast %7 : vector<5x1xf32> to vector<5x32xf32>
    %9 = arith.subf %1, %8 : vector<5x32xf32>
    %10 = arith.mulf %9, %9 : vector<5x32xf32>
    %cst_7 = arith.constant dense<0.000000e+00> : vector<5xf32>
    %11 = vector.multi_reduction <add>, %10, %cst_7 [1] : vector<5x32xf32> to vector<5xf32>
    %12 = vector.shape_cast %11 : vector<5xf32> to vector<5x1xf32>
    %cst_8 = arith.constant 3.200000e+01 : f32
    %13 = vector.broadcast %cst_8 : f32 to vector<5x1xf32>
    %14 = arith.divf %12, %13 : vector<5x1xf32>
    %15 = vector.broadcast %7 : vector<5x1xf32> to vector<5x32xf32>
    %16 = arith.subf %1, %15 : vector<5x32xf32>
    %cst_9 = arith.constant 9.99999996E-13 : f32
    %17 = vector.broadcast %cst_9 : f32 to vector<5x1xf32>
    %18 = arith.addf %14, %17 : vector<5x1xf32>
    %19 = math.rsqrt %18 : vector<5x1xf32>
    %20 = vector.broadcast %19 : vector<5x1xf32> to vector<5x32xf32>
    %21 = arith.mulf %16, %20 : vector<5x32xf32>
    %22 = vector.broadcast %2 : vector<1x32xf32> to vector<5x32xf32>
    %23 = arith.mulf %21, %22 : vector<5x32xf32>
    %24 = vector.broadcast %3 : vector<1x32xf32> to vector<5x32xf32>
    %25 = arith.addf %23, %24 : vector<5x32xf32>
    %cst_10 = arith.constant dense<0.000000e+00> : vector<32xf32>
    %26 = vector.multi_reduction <add>, %25, %cst_10 [0] : vector<5x32xf32> to vector<32xf32>
    %27 = vector.shape_cast %26 : vector<32xf32> to vector<1x32xf32>
    %28 = vector.extract_strided_slice %25 {offsets = [0, 0], sizes = [1, 32], strides = [1, 1]} : vector<5x32xf32> to vector<1x32xf32>
    %29 = arith.subf %27, %28 : vector<1x32xf32>
    %cst_11 = arith.constant 2.500000e-01 : f32
    %30 = vector.broadcast %cst_11 : f32 to vector<1x32xf32>
    %31 = arith.mulf %29, %30 : vector<1x32xf32>
    %c0_12 = arith.constant 0 : index
    %c0_13 = arith.constant 0 : index
    %c0_14 = arith.constant 0 : index
    %32 = vector.load %arg4[%c0_12, %c0_13, %c0_14] : memref<1x1x32xf32, #tpu.memory_space<vmem>>, vector<1x1x32xf32>
    %33 = vector.shape_cast %32 : vector<1x1x32xf32> to vector<1x32xf32>
    %34 = vector.shape_cast %31 : vector<1x32xf32> to vector<1x1x32xf32>
    tpu.vector_store %arg4[%c0_12, %c0_13, %c0_14], %34 {strides = array<i32>} : memref<1x1x32xf32, #tpu.memory_space<vmem>>, vector<1x1x32xf32>,
    return
  }
  func.func @transform_0(%arg0: i32) -> (i32, i32, i32) {
    %c0_i32 = arith.constant 0 : i32
    %c0_i32_0 = arith.constant 0 : i32
    %c0_i32_1 = arith.constant 0 : i32
    return %arg0, %c0_i32, %c0_i32_0 : i32, i32, i32
  }
  func.func @transform_1(%arg0: i32) -> (i32, i32) {
    %c0_i32 = arith.constant 0 : i32
    %c0_i32_0 = arith.constant 0 : i32
    %c0_i32_1 = arith.constant 0 : i32
    return %c0_i32, %c0_i32_0 : i32, i32
  }
  func.func @transform_2(%arg0: i32) -> (i32, i32) {
    %c0_i32 = arith.constant 0 : i32
    %c0_i32_0 = arith.constant 0 : i32
    %c0_i32_1 = arith.constant 0 : i32
    return %c0_i32, %c0_i32_0 : i32, i32
  }
  func.func @transform_3(%arg0: i32) -> (i32, i32, i32) {
    %c0_i32 = arith.constant 0 : i32
    %c0_i32_0 = arith.constant 0 : i32
    %c0_i32_1 = arith.constant 0 : i32
    return %arg0, %c0_i32, %c0_i32_0 : i32, i32, i32
  }
}

module attributes {stable_mosaic.version = 11 : i64} {
  func.func @_layer_kernel(%arg0: i32, %arg1: i32, %arg2: memref<1x5x32xf32, #tpu.memory_space<vmem>>, %arg3: memref<1x1x32xf32, #tpu.memory_space<vmem>>, %arg4: memref<1x1x32xf32, #tpu.memory_space<vmem>>, %arg5: memref<1x2x32x16xbf16, #tpu.memory_space<vmem>>, %arg6: memref<1x2x1x16xf32, #tpu.memory_space<vmem>>, %arg7: memref<1x2x32x16xbf16, #tpu.memory_space<vmem>>, %arg8: memref<1x2x1x16xf32, #tpu.memory_space<vmem>>, %arg9: memref<1x2x32x16xbf16, #tpu.memory_space<vmem>>, %arg10: memref<1x2x1x16xf32, #tpu.memory_space<vmem>>, %arg11: memref<1x2x16x32xbf16, #tpu.memory_space<vmem>>, %arg12: memref<1x1x32xf32, #tpu.memory_space<vmem>>, %arg13: memref<1x1x32xf32, #tpu.memory_space<vmem>>, %arg14: memref<1x1x32xf32, #tpu.memory_space<vmem>>, %arg15: memref<1x32x64xbf16, #tpu.memory_space<vmem>>, %arg16: memref<1x1x64xf32, #tpu.memory_space<vmem>>, %arg17: memref<1x64x32xbf16, #tpu.memory_space<vmem>>, %arg18: memref<1x1x32xf32, #tpu.memory_space<vmem>>, %arg19: memref<1x5x32xf32, #tpu.memory_space<vmem>>, %arg20: memref<5x32xf32, #tpu.memory_space<vmem>>) attributes {dimension_semantics = [#tpu.dimension_semantics<parallel>, #tpu.dimension_semantics<arbitrary>], iteration_bounds = array<i64: 2, 2>, scalar_prefetch = 0 : i64, scratch_operands = 1 : i64, tpu.core_type = #tpu.core_type<tc>, window_params = [{transform_indices = @transform_0, window_bounds = array<i64: 1, 5, 32>}, {transform_indices = @transform_1, window_bounds = array<i64: 1, 1, 32>}, {transform_indices = @transform_2, window_bounds = array<i64: 1, 1, 32>}, {transform_indices = @transform_3, window_bounds = array<i64: 1, 2, 32, 16>}, {transform_indices = @transform_4, window_bounds = array<i64: 1, 2, 1, 16>}, {transform_indices = @transform_5, window_bounds = array<i64: 1, 2, 32, 16>}, {transform_indices = @transform_6, window_bounds = array<i64: 1, 2, 1, 16>}, {transform_indices = @transform_7, window_bounds = array<i64: 1, 2, 32, 16>}, {transform_indices = @transform_8, window_bounds = array<i64: 1, 2, 1, 16>}, {transform_indices = @transform_9, window_bounds = array<i64: 1, 2, 16, 32>}, {transform_indices = @transform_10, window_bounds = array<i64: 1, 1, 32>}, {transform_indices = @transform_11, window_bounds = array<i64: 1, 1, 32>}, {transform_indices = @transform_12, window_bounds = array<i64: 1, 1, 32>}, {transform_indices = @transform_13, window_bounds = array<i64: 1, 32, 64>}, {transform_indices = @transform_14, window_bounds = array<i64: 1, 1, 64>}, {transform_indices = @transform_15, window_bounds = array<i64: 1, 64, 32>}, {transform_indices = @transform_16, window_bounds = array<i64: 1, 1, 32>}, {transform_indices = @transform_17, window_bounds = array<i64: 1, 5, 32>}]} {
    %c0_i32 = arith.constant 0 : i32
    %0 = arith.cmpi eq, %arg1, %c0_i32 : i32
    %1 = arith.extui %0 : i1 to i32
    %c0_i32_0 = arith.constant 0 : i32
    %2 = arith.cmpi ne, %1, %c0_i32_0 : i32
    scf.if %2 {
      %c0_132 = arith.constant 0 : index
      %c0_133 = arith.constant 0 : index
      %c0_134 = arith.constant 0 : index
      %217 = vector.load %arg2[%c0_132, %c0_133, %c0_134] : memref<1x5x32xf32, #tpu.memory_space<vmem>>, vector<1x5x32xf32>
      %218 = vector.shape_cast %217 : vector<1x5x32xf32> to vector<5x32xf32>
      %c0_135 = arith.constant 0 : index
      %c0_136 = arith.constant 0 : index
      %219 = vector.load %arg20[%c0_135, %c0_136] : memref<5x32xf32, #tpu.memory_space<vmem>>, vector<5x32xf32>
      tpu.vector_store %arg20[%c0_135, %c0_136], %218 {strides = array<i32>} : memref<5x32xf32, #tpu.memory_space<vmem>>, vector<5x32xf32>,
    } else {
    }
    %c0 = arith.constant 0 : index
    %c0_1 = arith.constant 0 : index
    %3 = vector.load %arg20[%c0, %c0_1] : memref<5x32xf32, #tpu.memory_space<vmem>>, vector<5x32xf32>
    %c0_2 = arith.constant 0 : index
    %c0_3 = arith.constant 0 : index
    %c0_4 = arith.constant 0 : index
    %4 = vector.load %arg3[%c0_2, %c0_3, %c0_4] : memref<1x1x32xf32, #tpu.memory_space<vmem>>, vector<1x1x32xf32>
    %5 = vector.shape_cast %4 : vector<1x1x32xf32> to vector<1x32xf32>
    %c0_5 = arith.constant 0 : index
    %c0_6 = arith.constant 0 : index
    %c0_7 = arith.constant 0 : index
    %6 = vector.load %arg4[%c0_5, %c0_6, %c0_7] : memref<1x1x32xf32, #tpu.memory_space<vmem>>, vector<1x1x32xf32>
    %7 = vector.shape_cast %6 : vector<1x1x32xf32> to vector<1x32xf32>
    %cst = arith.constant dense<0.000000e+00> : vector<5xf32>
    %8 = vector.multi_reduction <add>, %3, %cst [1] : vector<5x32xf32> to vector<5xf32>
    %9 = vector.shape_cast %8 : vector<5xf32> to vector<5x1xf32>
    %cst_8 = arith.constant 3.200000e+01 : f32
    %10 = vector.broadcast %cst_8 : f32 to vector<5x1xf32>
    %11 = arith.divf %9, %10 : vector<5x1xf32>
    %12 = vector.broadcast %11 : vector<5x1xf32> to vector<5x32xf32>
    %13 = arith.subf %3, %12 : vector<5x32xf32>
    %14 = arith.mulf %13, %13 : vector<5x32xf32>
    %cst_9 = arith.constant dense<0.000000e+00> : vector<5xf32>
    %15 = vector.multi_reduction <add>, %14, %cst_9 [1] : vector<5x32xf32> to vector<5xf32>
    %16 = vector.shape_cast %15 : vector<5xf32> to vector<5x1xf32>
    %cst_10 = arith.constant 3.200000e+01 : f32
    %17 = vector.broadcast %cst_10 : f32 to vector<5x1xf32>
    %18 = arith.divf %16, %17 : vector<5x1xf32>
    %19 = vector.broadcast %11 : vector<5x1xf32> to vector<5x32xf32>
    %20 = arith.subf %3, %19 : vector<5x32xf32>
    %cst_11 = arith.constant 9.99999996E-13 : f32
    %21 = vector.broadcast %cst_11 : f32 to vector<5x1xf32>
    %22 = arith.addf %18, %21 : vector<5x1xf32>
    %23 = math.rsqrt %22 : vector<5x1xf32>
    %24 = vector.broadcast %23 : vector<5x1xf32> to vector<5x32xf32>
    %25 = arith.mulf %20, %24 : vector<5x32xf32>
    %26 = vector.broadcast %5 : vector<1x32xf32> to vector<5x32xf32>
    %27 = arith.mulf %25, %26 : vector<5x32xf32>
    %28 = vector.broadcast %7 : vector<1x32xf32> to vector<5x32xf32>
    %29 = arith.addf %27, %28 : vector<5x32xf32>
    %cst_12 = arith.constant 0.000000e+00 : f32
    %30 = vector.broadcast %cst_12 : f32 to vector<5x32xf32>
    %c0_13 = arith.constant 0 : index
    %c0_14 = arith.constant 0 : index
    %c0_15 = arith.constant 0 : index
    %c0_16 = arith.constant 0 : index
    %31 = vector.load %arg5[%c0_13, %c0_14, %c0_15, %c0_16] : memref<1x2x32x16xbf16, #tpu.memory_space<vmem>>, vector<1x1x32x16xbf16>
    %32 = vector.shape_cast %31 : vector<1x1x32x16xbf16> to vector<32x16xbf16>
    %33 = arith.truncf %29 : vector<5x32xf32> to vector<5x32xbf16>
    %cst_17 = arith.constant dense<0.000000e+00> : vector<5x16xf32>
    %34 = tpu.matmul %33, %32, %cst_17 {dimension_numbers = #tpu.dot_dimension_numbers<[1], [0], [0], [1], [0, 0, 1, 1], [], []>} : vector<5x32xbf16>, vector<32x16xbf16>, vector<5x16xf32> -> vector<5x16xf32>
    %c0_18 = arith.constant 0 : index
    %c0_19 = arith.constant 0 : index
    %c0_20 = arith.constant 0 : index
    %c0_21 = arith.constant 0 : index
    %35 = vector.load %arg6[%c0_18, %c0_19, %c0_20, %c0_21] : memref<1x2x1x16xf32, #tpu.memory_space<vmem>>, vector<1x1x1x16xf32>
    %36 = vector.shape_cast %35 : vector<1x1x1x16xf32> to vector<1x16xf32>
    %37 = vector.broadcast %36 : vector<1x16xf32> to vector<5x16xf32>
    %38 = arith.addf %34, %37 : vector<5x16xf32>
    %c0_22 = arith.constant 0 : index
    %c0_23 = arith.constant 0 : index
    %c0_24 = arith.constant 0 : index
    %c0_25 = arith.constant 0 : index
    %39 = vector.load %arg7[%c0_22, %c0_23, %c0_24, %c0_25] : memref<1x2x32x16xbf16, #tpu.memory_space<vmem>>, vector<1x1x32x16xbf16>
    %40 = vector.shape_cast %39 : vector<1x1x32x16xbf16> to vector<32x16xbf16>
    %41 = arith.truncf %29 : vector<5x32xf32> to vector<5x32xbf16>
    %cst_26 = arith.constant dense<0.000000e+00> : vector<5x16xf32>
    %42 = tpu.matmul %41, %40, %cst_26 {dimension_numbers = #tpu.dot_dimension_numbers<[1], [0], [0], [1], [0, 0, 1, 1], [], []>} : vector<5x32xbf16>, vector<32x16xbf16>, vector<5x16xf32> -> vector<5x16xf32>
    %c0_27 = arith.constant 0 : index
    %c0_28 = arith.constant 0 : index
    %c0_29 = arith.constant 0 : index
    %c0_30 = arith.constant 0 : index
    %43 = vector.load %arg8[%c0_27, %c0_28, %c0_29, %c0_30] : memref<1x2x1x16xf32, #tpu.memory_space<vmem>>, vector<1x1x1x16xf32>
    %44 = vector.shape_cast %43 : vector<1x1x1x16xf32> to vector<1x16xf32>
    %45 = vector.broadcast %44 : vector<1x16xf32> to vector<5x16xf32>
    %46 = arith.addf %42, %45 : vector<5x16xf32>
    %c0_31 = arith.constant 0 : index
    %c0_32 = arith.constant 0 : index
    %c0_33 = arith.constant 0 : index
    %c0_34 = arith.constant 0 : index
    %47 = vector.load %arg9[%c0_31, %c0_32, %c0_33, %c0_34] : memref<1x2x32x16xbf16, #tpu.memory_space<vmem>>, vector<1x1x32x16xbf16>
    %48 = vector.shape_cast %47 : vector<1x1x32x16xbf16> to vector<32x16xbf16>
    %49 = arith.truncf %29 : vector<5x32xf32> to vector<5x32xbf16>
    %cst_35 = arith.constant dense<0.000000e+00> : vector<5x16xf32>
    %50 = tpu.matmul %49, %48, %cst_35 {dimension_numbers = #tpu.dot_dimension_numbers<[1], [0], [0], [1], [0, 0, 1, 1], [], []>} : vector<5x32xbf16>, vector<32x16xbf16>, vector<5x16xf32> -> vector<5x16xf32>
    %c0_36 = arith.constant 0 : index
    %c0_37 = arith.constant 0 : index
    %c0_38 = arith.constant 0 : index
    %c0_39 = arith.constant 0 : index
    %51 = vector.load %arg10[%c0_36, %c0_37, %c0_38, %c0_39] : memref<1x2x1x16xf32, #tpu.memory_space<vmem>>, vector<1x1x1x16xf32>
    %52 = vector.shape_cast %51 : vector<1x1x1x16xf32> to vector<1x16xf32>
    %53 = vector.broadcast %52 : vector<1x16xf32> to vector<5x16xf32>
    %54 = arith.addf %50, %53 : vector<5x16xf32>
    %55 = arith.truncf %38 : vector<5x16xf32> to vector<5x16xbf16>
    %56 = arith.truncf %46 : vector<5x16xf32> to vector<5x16xbf16>
    %cst_40 = arith.constant dense<0.000000e+00> : vector<5x5xf32>
    %57 = tpu.matmul %55, %56, %cst_40 {dimension_numbers = #tpu.dot_dimension_numbers<[1], [1], [0], [0], [0, 0, 1, 0], [], []>} : vector<5x16xbf16>, vector<5x16xbf16>, vector<5x5xf32> -> vector<5x5xf32>
    %cst_41 = arith.constant 2.500000e-01 : f32
    %58 = vector.broadcast %cst_41 : f32 to vector<5x5xf32>
    %59 = arith.mulf %57, %58 : vector<5x5xf32>
    %cst_42 = arith.constant dense<0xFF800000> : vector<5xf32>
    %60 = vector.multi_reduction <maximumf>, %59, %cst_42 [1] : vector<5x5xf32> to vector<5xf32>
    %61 = vector.shape_cast %60 : vector<5xf32> to vector<5x1xf32>
    %62 = vector.broadcast %61 : vector<5x1xf32> to vector<5x5xf32>
    %63 = arith.subf %59, %62 : vector<5x5xf32>
    %64 = math.exp %63 : vector<5x5xf32>
    %cst_43 = arith.constant dense<0.000000e+00> : vector<5xf32>
    %65 = vector.multi_reduction <add>, %64, %cst_43 [1] : vector<5x5xf32> to vector<5xf32>
    %66 = vector.shape_cast %65 : vector<5xf32> to vector<5x1xf32>
    %67 = tpu.reciprocal %66 {approx = true} : vector<5x1xf32> -> vector<5x1xf32>
    %68 = vector.broadcast %67 : vector<5x1xf32> to vector<5x5xf32>
    %69 = arith.mulf %64, %68 : vector<5x5xf32>
    %70 = arith.truncf %69 : vector<5x5xf32> to vector<5x5xbf16>
    %71 = arith.truncf %54 : vector<5x16xf32> to vector<5x16xbf16>
    %cst_44 = arith.constant dense<0.000000e+00> : vector<5x16xf32>
    %72 = tpu.matmul %70, %71, %cst_44 {dimension_numbers = #tpu.dot_dimension_numbers<[1], [0], [0], [1], [0, 0, 1, 1], [], []>} : vector<5x5xbf16>, vector<5x16xbf16>, vector<5x16xf32> -> vector<5x16xf32>
    %c0_45 = arith.constant 0 : index
    %c0_46 = arith.constant 0 : index
    %c0_47 = arith.constant 0 : index
    %c0_48 = arith.constant 0 : index
    %73 = vector.load %arg11[%c0_45, %c0_46, %c0_47, %c0_48] : memref<1x2x16x32xbf16, #tpu.memory_space<vmem>>, vector<1x1x16x32xbf16>
    %74 = vector.shape_cast %73 : vector<1x1x16x32xbf16> to vector<16x32xbf16>
    %75 = arith.truncf %72 : vector<5x16xf32> to vector<5x16xbf16>
    %cst_49 = arith.constant dense<0.000000e+00> : vector<5x32xf32>
    %76 = tpu.matmul %75, %74, %cst_49 {dimension_numbers = #tpu.dot_dimension_numbers<[1], [0], [0], [1], [0, 0, 1, 1], [], []>} : vector<5x16xbf16>, vector<16x32xbf16>, vector<5x32xf32> -> vector<5x32xf32>
    %77 = arith.addf %30, %76 : vector<5x32xf32>
    %c0_50 = arith.constant 0 : index
    %c1 = arith.constant 1 : index
    %c0_51 = arith.constant 0 : index
    %c0_52 = arith.constant 0 : index
    %78 = vector.load %arg5[%c0_50, %c1, %c0_51, %c0_52] : memref<1x2x32x16xbf16, #tpu.memory_space<vmem>>, vector<1x1x32x16xbf16>
    %79 = vector.shape_cast %78 : vector<1x1x32x16xbf16> to vector<32x16xbf16>
    %80 = arith.truncf %29 : vector<5x32xf32> to vector<5x32xbf16>
    %cst_53 = arith.constant dense<0.000000e+00> : vector<5x16xf32>
    %81 = tpu.matmul %80, %79, %cst_53 {dimension_numbers = #tpu.dot_dimension_numbers<[1], [0], [0], [1], [0, 0, 1, 1], [], []>} : vector<5x32xbf16>, vector<32x16xbf16>, vector<5x16xf32> -> vector<5x16xf32>
    %c0_54 = arith.constant 0 : index
    %c1_55 = arith.constant 1 : index
    %c0_56 = arith.constant 0 : index
    %c0_57 = arith.constant 0 : index
    %82 = vector.load %arg6[%c0_54, %c1_55, %c0_56, %c0_57] : memref<1x2x1x16xf32, #tpu.memory_space<vmem>>, vector<1x1x1x16xf32>
    %83 = vector.shape_cast %82 : vector<1x1x1x16xf32> to vector<1x16xf32>
    %84 = vector.broadcast %83 : vector<1x16xf32> to vector<5x16xf32>
    %85 = arith.addf %81, %84 : vector<5x16xf32>
    %c0_58 = arith.constant 0 : index
    %c1_59 = arith.constant 1 : index
    %c0_60 = arith.constant 0 : index
    %c0_61 = arith.constant 0 : index
    %86 = vector.load %arg7[%c0_58, %c1_59, %c0_60, %c0_61] : memref<1x2x32x16xbf16, #tpu.memory_space<vmem>>, vector<1x1x32x16xbf16>
    %87 = vector.shape_cast %86 : vector<1x1x32x16xbf16> to vector<32x16xbf16>
    %88 = arith.truncf %29 : vector<5x32xf32> to vector<5x32xbf16>
    %cst_62 = arith.constant dense<0.000000e+00> : vector<5x16xf32>
    %89 = tpu.matmul %88, %87, %cst_62 {dimension_numbers = #tpu.dot_dimension_numbers<[1], [0], [0], [1], [0, 0, 1, 1], [], []>} : vector<5x32xbf16>, vector<32x16xbf16>, vector<5x16xf32> -> vector<5x16xf32>
    %c0_63 = arith.constant 0 : index
    %c1_64 = arith.constant 1 : index
    %c0_65 = arith.constant 0 : index
    %c0_66 = arith.constant 0 : index
    %90 = vector.load %arg8[%c0_63, %c1_64, %c0_65, %c0_66] : memref<1x2x1x16xf32, #tpu.memory_space<vmem>>, vector<1x1x1x16xf32>
    %91 = vector.shape_cast %90 : vector<1x1x1x16xf32> to vector<1x16xf32>
    %92 = vector.broadcast %91 : vector<1x16xf32> to vector<5x16xf32>
    %93 = arith.addf %89, %92 : vector<5x16xf32>
    %c0_67 = arith.constant 0 : index
    %c1_68 = arith.constant 1 : index
    %c0_69 = arith.constant 0 : index
    %c0_70 = arith.constant 0 : index
    %94 = vector.load %arg9[%c0_67, %c1_68, %c0_69, %c0_70] : memref<1x2x32x16xbf16, #tpu.memory_space<vmem>>, vector<1x1x32x16xbf16>
    %95 = vector.shape_cast %94 : vector<1x1x32x16xbf16> to vector<32x16xbf16>
    %96 = arith.truncf %29 : vector<5x32xf32> to vector<5x32xbf16>
    %cst_71 = arith.constant dense<0.000000e+00> : vector<5x16xf32>
    %97 = tpu.matmul %96, %95, %cst_71 {dimension_numbers = #tpu.dot_dimension_numbers<[1], [0], [0], [1], [0, 0, 1, 1], [], []>} : vector<5x32xbf16>, vector<32x16xbf16>, vector<5x16xf32> -> vector<5x16xf32>
    %c0_72 = arith.constant 0 : index
    %c1_73 = arith.constant 1 : index
    %c0_74 = arith.constant 0 : index
    %c0_75 = arith.constant 0 : index
    %98 = vector.load %arg10[%c0_72, %c1_73, %c0_74, %c0_75] : memref<1x2x1x16xf32, #tpu.memory_space<vmem>>, vector<1x1x1x16xf32>
    %99 = vector.shape_cast %98 : vector<1x1x1x16xf32> to vector<1x16xf32>
    %100 = vector.broadcast %99 : vector<1x16xf32> to vector<5x16xf32>
    %101 = arith.addf %97, %100 : vector<5x16xf32>
    %102 = arith.truncf %85 : vector<5x16xf32> to vector<5x16xbf16>
    %103 = arith.truncf %93 : vector<5x16xf32> to vector<5x16xbf16>
    %cst_76 = arith.constant dense<0.000000e+00> : vector<5x5xf32>
    %104 = tpu.matmul %102, %103, %cst_76 {dimension_numbers = #tpu.dot_dimension_numbers<[1], [1], [0], [0], [0, 0, 1, 0], [], []>} : vector<5x16xbf16>, vector<5x16xbf16>, vector<5x5xf32> -> vector<5x5xf32>
    %cst_77 = arith.constant 2.500000e-01 : f32
    %105 = vector.broadcast %cst_77 : f32 to vector<5x5xf32>
    %106 = arith.mulf %104, %105 : vector<5x5xf32>
    %cst_78 = arith.constant dense<0xFF800000> : vector<5xf32>
    %107 = vector.multi_reduction <maximumf>, %106, %cst_78 [1] : vector<5x5xf32> to vector<5xf32>
    %108 = vector.shape_cast %107 : vector<5xf32> to vector<5x1xf32>
    %109 = vector.broadcast %108 : vector<5x1xf32> to vector<5x5xf32>
    %110 = arith.subf %106, %109 : vector<5x5xf32>
    %111 = math.exp %110 : vector<5x5xf32>
    %cst_79 = arith.constant dense<0.000000e+00> : vector<5xf32>
    %112 = vector.multi_reduction <add>, %111, %cst_79 [1] : vector<5x5xf32> to vector<5xf32>
    %113 = vector.shape_cast %112 : vector<5xf32> to vector<5x1xf32>
    %114 = tpu.reciprocal %113 {approx = true} : vector<5x1xf32> -> vector<5x1xf32>
    %115 = vector.broadcast %114 : vector<5x1xf32> to vector<5x5xf32>
    %116 = arith.mulf %111, %115 : vector<5x5xf32>
    %117 = arith.truncf %116 : vector<5x5xf32> to vector<5x5xbf16>
    %118 = arith.truncf %101 : vector<5x16xf32> to vector<5x16xbf16>
    %cst_80 = arith.constant dense<0.000000e+00> : vector<5x16xf32>
    %119 = tpu.matmul %117, %118, %cst_80 {dimension_numbers = #tpu.dot_dimension_numbers<[1], [0], [0], [1], [0, 0, 1, 1], [], []>} : vector<5x5xbf16>, vector<5x16xbf16>, vector<5x16xf32> -> vector<5x16xf32>
    %c0_81 = arith.constant 0 : index
    %c1_82 = arith.constant 1 : index
    %c0_83 = arith.constant 0 : index
    %c0_84 = arith.constant 0 : index
    %120 = vector.load %arg11[%c0_81, %c1_82, %c0_83, %c0_84] : memref<1x2x16x32xbf16, #tpu.memory_space<vmem>>, vector<1x1x16x32xbf16>
    %121 = vector.shape_cast %120 : vector<1x1x16x32xbf16> to vector<16x32xbf16>
    %122 = arith.truncf %119 : vector<5x16xf32> to vector<5x16xbf16>
    %cst_85 = arith.constant dense<0.000000e+00> : vector<5x32xf32>
    %123 = tpu.matmul %122, %121, %cst_85 {dimension_numbers = #tpu.dot_dimension_numbers<[1], [0], [0], [1], [0, 0, 1, 1], [], []>} : vector<5x16xbf16>, vector<16x32xbf16>, vector<5x32xf32> -> vector<5x32xf32>
    %124 = arith.addf %77, %123 : vector<5x32xf32>
    %125 = arith.addf %3, %124 : vector<5x32xf32>
    %c0_86 = arith.constant 0 : index
    %c0_87 = arith.constant 0 : index
    %c0_88 = arith.constant 0 : index
    %126 = vector.load %arg12[%c0_86, %c0_87, %c0_88] : memref<1x1x32xf32, #tpu.memory_space<vmem>>, vector<1x1x32xf32>
    %127 = vector.shape_cast %126 : vector<1x1x32xf32> to vector<1x32xf32>
    %128 = vector.broadcast %127 : vector<1x32xf32> to vector<5x32xf32>
    %129 = arith.addf %125, %128 : vector<5x32xf32>
    %c0_89 = arith.constant 0 : index
    %c0_90 = arith.constant 0 : index
    %c0_91 = arith.constant 0 : index
    %130 = vector.load %arg13[%c0_89, %c0_90, %c0_91] : memref<1x1x32xf32, #tpu.memory_space<vmem>>, vector<1x1x32xf32>
    %131 = vector.shape_cast %130 : vector<1x1x32xf32> to vector<1x32xf32>
    %c0_92 = arith.constant 0 : index
    %c0_93 = arith.constant 0 : index
    %c0_94 = arith.constant 0 : index
    %132 = vector.load %arg14[%c0_92, %c0_93, %c0_94] : memref<1x1x32xf32, #tpu.memory_space<vmem>>, vector<1x1x32xf32>
    %133 = vector.shape_cast %132 : vector<1x1x32xf32> to vector<1x32xf32>
    %cst_95 = arith.constant dense<0.000000e+00> : vector<5xf32>
    %134 = vector.multi_reduction <add>, %129, %cst_95 [1] : vector<5x32xf32> to vector<5xf32>
    %135 = vector.shape_cast %134 : vector<5xf32> to vector<5x1xf32>
    %cst_96 = arith.constant 3.200000e+01 : f32
    %136 = vector.broadcast %cst_96 : f32 to vector<5x1xf32>
    %137 = arith.divf %135, %136 : vector<5x1xf32>
    %138 = vector.broadcast %137 : vector<5x1xf32> to vector<5x32xf32>
    %139 = arith.subf %129, %138 : vector<5x32xf32>
    %140 = arith.mulf %139, %139 : vector<5x32xf32>
    %cst_97 = arith.constant dense<0.000000e+00> : vector<5xf32>
    %141 = vector.multi_reduction <add>, %140, %cst_97 [1] : vector<5x32xf32> to vector<5xf32>
    %142 = vector.shape_cast %141 : vector<5xf32> to vector<5x1xf32>
    %cst_98 = arith.constant 3.200000e+01 : f32
    %143 = vector.broadcast %cst_98 : f32 to vector<5x1xf32>
    %144 = arith.divf %142, %143 : vector<5x1xf32>
    %145 = vector.broadcast %137 : vector<5x1xf32> to vector<5x32xf32>
    %146 = arith.subf %129, %145 : vector<5x32xf32>
    %cst_99 = arith.constant 9.99999996E-13 : f32
    %147 = vector.broadcast %cst_99 : f32 to vector<5x1xf32>
    %148 = arith.addf %144, %147 : vector<5x1xf32>
    %149 = math.rsqrt %148 : vector<5x1xf32>
    %150 = vector.broadcast %149 : vector<5x1xf32> to vector<5x32xf32>
    %151 = arith.mulf %146, %150 : vector<5x32xf32>
    %152 = vector.broadcast %131 : vector<1x32xf32> to vector<5x32xf32>
    %153 = arith.mulf %151, %152 : vector<5x32xf32>
    %154 = vector.broadcast %133 : vector<1x32xf32> to vector<5x32xf32>
    %155 = arith.addf %153, %154 : vector<5x32xf32>
    %c0_100 = arith.constant 0 : index
    %c0_101 = arith.constant 0 : index
    %c0_102 = arith.constant 0 : index
    %156 = vector.load %arg15[%c0_100, %c0_101, %c0_102] : memref<1x32x64xbf16, #tpu.memory_space<vmem>>, vector<1x32x64xbf16>
    %157 = vector.shape_cast %156 : vector<1x32x64xbf16> to vector<32x64xbf16>
    %158 = arith.truncf %155 : vector<5x32xf32> to vector<5x32xbf16>
    %cst_103 = arith.constant dense<0.000000e+00> : vector<5x64xf32>
    %159 = tpu.matmul %158, %157, %cst_103 {dimension_numbers = #tpu.dot_dimension_numbers<[1], [0], [0], [1], [0, 0, 1, 1], [], []>} : vector<5x32xbf16>, vector<32x64xbf16>, vector<5x64xf32> -> vector<5x64xf32>
    %c0_104 = arith.constant 0 : index
    %c0_105 = arith.constant 0 : index
    %c0_106 = arith.constant 0 : index
    %160 = vector.load %arg16[%c0_104, %c0_105, %c0_106] : memref<1x1x64xf32, #tpu.memory_space<vmem>>, vector<1x1x64xf32>
    %161 = vector.shape_cast %160 : vector<1x1x64xf32> to vector<1x64xf32>
    %162 = vector.broadcast %161 : vector<1x64xf32> to vector<5x64xf32>
    %163 = arith.addf %159, %162 : vector<5x64xf32>
    %cst_107 = arith.constant 5.000000e-01 : f32
    %164 = vector.broadcast %cst_107 : f32 to vector<5x64xf32>
    %165 = arith.mulf %164, %163 : vector<5x64xf32>
    %cst_108 = arith.constant 0.707106769 : f32
    %166 = vector.broadcast %cst_108 : f32 to vector<5x64xf32>
    %167 = arith.mulf %163, %166 : vector<5x64xf32>
    %168 = math.absf %167 : vector<5x64xf32>
    %cst_109 = arith.constant 0.327591091 : f32
    %169 = vector.broadcast %cst_109 : f32 to vector<5x64xf32>
    %170 = arith.mulf %169, %168 : vector<5x64xf32>
    %cst_110 = arith.constant 1.000000e+00 : f32
    %171 = vector.broadcast %cst_110 : f32 to vector<5x64xf32>
    %172 = arith.addf %171, %170 : vector<5x64xf32>
    %cst_111 = arith.constant 1.000000e+00 : f32
    %173 = vector.broadcast %cst_111 : f32 to vector<5x64xf32>
    %174 = arith.divf %173, %172 : vector<5x64xf32>
    %cst_112 = arith.constant 1.06140542 : f32
    %175 = vector.broadcast %cst_112 : f32 to vector<5x64xf32>
    %176 = arith.mulf %175, %174 : vector<5x64xf32>
    %cst_113 = arith.constant -1.45315206 : f32
    %177 = vector.broadcast %cst_113 : f32 to vector<5x64xf32>
    %178 = arith.addf %176, %177 : vector<5x64xf32>
    %179 = arith.mulf %178, %174 : vector<5x64xf32>
    %cst_114 = arith.constant 1.42141378 : f32
    %180 = vector.broadcast %cst_114 : f32 to vector<5x64xf32>
    %181 = arith.addf %179, %180 : vector<5x64xf32>
    %182 = arith.mulf %181, %174 : vector<5x64xf32>
    %cst_115 = arith.constant -0.284496725 : f32
    %183 = vector.broadcast %cst_115 : f32 to vector<5x64xf32>
    %184 = arith.addf %182, %183 : vector<5x64xf32>
    %185 = arith.mulf %184, %174 : vector<5x64xf32>
    %cst_116 = arith.constant 0.254829586 : f32
    %186 = vector.broadcast %cst_116 : f32 to vector<5x64xf32>
    %187 = arith.addf %185, %186 : vector<5x64xf32>
    %188 = arith.mulf %187, %174 : vector<5x64xf32>
    %cst_117 = arith.constant 0.000000e+00 : f32
    %189 = vector.broadcast %cst_117 : f32 to vector<5x64xf32>
    %190 = arith.subf %189, %168 : vector<5x64xf32>
    %191 = arith.mulf %190, %168 : vector<5x64xf32>
    %192 = math.exp %191 : vector<5x64xf32>
    %193 = arith.mulf %188, %192 : vector<5x64xf32>
    %cst_118 = arith.constant 1.000000e+00 : f32
    %194 = vector.broadcast %cst_118 : f32 to vector<5x64xf32>
    %195 = arith.subf %194, %193 : vector<5x64xf32>
    %cst_119 = arith.constant 0.000000e+00 : f32
    %196 = vector.broadcast %cst_119 : f32 to vector<5x64xf32>
    %197 = arith.cmpf oge, %167, %196 : vector<5x64xf32>
    %cst_120 = arith.constant 0.000000e+00 : f32
    %198 = vector.broadcast %cst_120 : f32 to vector<5x64xf32>
    %199 = arith.subf %198, %195 : vector<5x64xf32>
    %200 = arith.select %197, %195, %199 : vector<5x64xi1>, vector<5x64xf32>
    %cst_121 = arith.constant 1.000000e+00 : f32
    %201 = vector.broadcast %cst_121 : f32 to vector<5x64xf32>
    %202 = arith.addf %201, %200 : vector<5x64xf32>
    %203 = arith.mulf %165, %202 : vector<5x64xf32>
    %c0_122 = arith.constant 0 : index
    %c0_123 = arith.constant 0 : index
    %c0_124 = arith.constant 0 : index
    %204 = vector.load %arg17[%c0_122, %c0_123, %c0_124] : memref<1x64x32xbf16, #tpu.memory_space<vmem>>, vector<1x64x32xbf16>
    %205 = vector.shape_cast %204 : vector<1x64x32xbf16> to vector<64x32xbf16>
    %206 = arith.truncf %203 : vector<5x64xf32> to vector<5x64xbf16>
    %cst_125 = arith.constant dense<0.000000e+00> : vector<5x32xf32>
    %207 = tpu.matmul %206, %205, %cst_125 {dimension_numbers = #tpu.dot_dimension_numbers<[1], [0], [0], [1], [0, 0, 1, 1], [], []>} : vector<5x64xbf16>, vector<64x32xbf16>, vector<5x32xf32> -> vector<5x32xf32>
    %208 = arith.addf %129, %207 : vector<5x32xf32>
    %c0_126 = arith.constant 0 : index
    %c0_127 = arith.constant 0 : index
    %c0_128 = arith.constant 0 : index
    %209 = vector.load %arg18[%c0_126, %c0_127, %c0_128] : memref<1x1x32xf32, #tpu.memory_space<vmem>>, vector<1x1x32xf32>
    %210 = vector.shape_cast %209 : vector<1x1x32xf32> to vector<1x32xf32>
    %211 = vector.broadcast %210 : vector<1x32xf32> to vector<5x32xf32>
    %212 = arith.addf %208, %211 : vector<5x32xf32>
    %c0_129 = arith.constant 0 : index
    %c0_130 = arith.constant 0 : index
    %213 = vector.load %arg20[%c0_129, %c0_130] : memref<5x32xf32, #tpu.memory_space<vmem>>, vector<5x32xf32>
    tpu.vector_store %arg20[%c0_129, %c0_130], %212 {strides = array<i32>} : memref<5x32xf32, #tpu.memory_space<vmem>>, vector<5x32xf32>,
    %c1_i32 = arith.constant 1 : i32
    %214 = arith.cmpi eq, %arg1, %c1_i32 : i32
    %215 = arith.extui %214 : i1 to i32
    %c0_i32_131 = arith.constant 0 : i32
    %216 = arith.cmpi ne, %215, %c0_i32_131 : i32
    scf.if %216 {
      %c0_132 = arith.constant 0 : index
      %c0_133 = arith.constant 0 : index
      %c0_134 = arith.constant 0 : index
      %217 = vector.load %arg19[%c0_132, %c0_133, %c0_134] : memref<1x5x32xf32, #tpu.memory_space<vmem>>, vector<1x5x32xf32>
      %218 = vector.shape_cast %217 : vector<1x5x32xf32> to vector<5x32xf32>
      %219 = vector.shape_cast %212 : vector<5x32xf32> to vector<1x5x32xf32>
      tpu.vector_store %arg19[%c0_132, %c0_133, %c0_134], %219 {strides = array<i32>} : memref<1x5x32xf32, #tpu.memory_space<vmem>>, vector<1x5x32xf32>,
    } else {
    }
    return
  }
  func.func @transform_0(%arg0: i32, %arg1: i32) -> (i32, i32, i32) {
    %c0_i32 = arith.constant 0 : i32
    %c0_i32_0 = arith.constant 0 : i32
    %c0_i32_1 = arith.constant 0 : i32
    return %arg0, %c0_i32, %c0_i32_0 : i32, i32, i32
  }
  func.func @transform_1(%arg0: i32, %arg1: i32) -> (i32, i32, i32) {
    %c0_i32 = arith.constant 0 : i32
    %c0_i32_0 = arith.constant 0 : i32
    %c0_i32_1 = arith.constant 0 : i32
    return %arg1, %c0_i32, %c0_i32_0 : i32, i32, i32
  }
  func.func @transform_2(%arg0: i32, %arg1: i32) -> (i32, i32, i32) {
    %c0_i32 = arith.constant 0 : i32
    %c0_i32_0 = arith.constant 0 : i32
    %c0_i32_1 = arith.constant 0 : i32
    return %arg1, %c0_i32, %c0_i32_0 : i32, i32, i32
  }
  func.func @transform_3(%arg0: i32, %arg1: i32) -> (i32, i32, i32, i32) {
    %c0_i32 = arith.constant 0 : i32
    %c0_i32_0 = arith.constant 0 : i32
    %c0_i32_1 = arith.constant 0 : i32
    %c0_i32_2 = arith.constant 0 : i32
    return %arg1, %c0_i32, %c0_i32_0, %c0_i32_1 : i32, i32, i32, i32
  }
  func.func @transform_4(%arg0: i32, %arg1: i32) -> (i32, i32, i32, i32) {
    %c0_i32 = arith.constant 0 : i32
    %c0_i32_0 = arith.constant 0 : i32
    %c0_i32_1 = arith.constant 0 : i32
    %c0_i32_2 = arith.constant 0 : i32
    return %arg1, %c0_i32, %c0_i32_0, %c0_i32_1 : i32, i32, i32, i32
  }
  func.func @transform_5(%arg0: i32, %arg1: i32) -> (i32, i32, i32, i32) {
    %c0_i32 = arith.constant 0 : i32
    %c0_i32_0 = arith.constant 0 : i32
    %c0_i32_1 = arith.constant 0 : i32
    %c0_i32_2 = arith.constant 0 : i32
    return %arg1, %c0_i32, %c0_i32_0, %c0_i32_1 : i32, i32, i32, i32
  }
  func.func @transform_6(%arg0: i32, %arg1: i32) -> (i32, i32, i32, i32) {
    %c0_i32 = arith.constant 0 : i32
    %c0_i32_0 = arith.constant 0 : i32
    %c0_i32_1 = arith.constant 0 : i32
    %c0_i32_2 = arith.constant 0 : i32
    return %arg1, %c0_i32, %c0_i32_0, %c0_i32_1 : i32, i32, i32, i32
  }
  func.func @transform_7(%arg0: i32, %arg1: i32) -> (i32, i32, i32, i32) {
    %c0_i32 = arith.constant 0 : i32
    %c0_i32_0 = arith.constant 0 : i32
    %c0_i32_1 = arith.constant 0 : i32
    %c0_i32_2 = arith.constant 0 : i32
    return %arg1, %c0_i32, %c0_i32_0, %c0_i32_1 : i32, i32, i32, i32
  }
  func.func @transform_8(%arg0: i32, %arg1: i32) -> (i32, i32, i32, i32) {
    %c0_i32 = arith.constant 0 : i32
    %c0_i32_0 = arith.constant 0 : i32
    %c0_i32_1 = arith.constant 0 : i32
    %c0_i32_2 = arith.constant 0 : i32
    return %arg1, %c0_i32, %c0_i32_0, %c0_i32_1 : i32, i32, i32, i32
  }
  func.func @transform_9(%arg0: i32, %arg1: i32) -> (i32, i32, i32, i32) {
    %c0_i32 = arith.constant 0 : i32
    %c0_i32_0 = arith.constant 0 : i32
    %c0_i32_1 = arith.constant 0 : i32
    %c0_i32_2 = arith.constant 0 : i32
    return %arg1, %c0_i32, %c0_i32_0, %c0_i32_1 : i32, i32, i32, i32
  }
  func.func @transform_10(%arg0: i32, %arg1: i32) -> (i32, i32, i32) {
    %c0_i32 = arith.constant 0 : i32
    %c0_i32_0 = arith.constant 0 : i32
    %c0_i32_1 = arith.constant 0 : i32
    return %arg1, %c0_i32, %c0_i32_0 : i32, i32, i32
  }
  func.func @transform_11(%arg0: i32, %arg1: i32) -> (i32, i32, i32) {
    %c0_i32 = arith.constant 0 : i32
    %c0_i32_0 = arith.constant 0 : i32
    %c0_i32_1 = arith.constant 0 : i32
    return %arg1, %c0_i32, %c0_i32_0 : i32, i32, i32
  }
  func.func @transform_12(%arg0: i32, %arg1: i32) -> (i32, i32, i32) {
    %c0_i32 = arith.constant 0 : i32
    %c0_i32_0 = arith.constant 0 : i32
    %c0_i32_1 = arith.constant 0 : i32
    return %arg1, %c0_i32, %c0_i32_0 : i32, i32, i32
  }
  func.func @transform_13(%arg0: i32, %arg1: i32) -> (i32, i32, i32) {
    %c0_i32 = arith.constant 0 : i32
    %c0_i32_0 = arith.constant 0 : i32
    %c0_i32_1 = arith.constant 0 : i32
    return %arg1, %c0_i32, %c0_i32_0 : i32, i32, i32
  }
  func.func @transform_14(%arg0: i32, %arg1: i32) -> (i32, i32, i32) {
    %c0_i32 = arith.constant 0 : i32
    %c0_i32_0 = arith.constant 0 : i32
    %c0_i32_1 = arith.constant 0 : i32
    return %arg1, %c0_i32, %c0_i32_0 : i32, i32, i32
  }
  func.func @transform_15(%arg0: i32, %arg1: i32) -> (i32, i32, i32) {
    %c0_i32 = arith.constant 0 : i32
    %c0_i32_0 = arith.constant 0 : i32
    %c0_i32_1 = arith.constant 0 : i32
    return %arg1, %c0_i32, %c0_i32_0 : i32, i32, i32
  }
  func.func @transform_16(%arg0: i32, %arg1: i32) -> (i32, i32, i32) {
    %c0_i32 = arith.constant 0 : i32
    %c0_i32_0 = arith.constant 0 : i32
    %c0_i32_1 = arith.constant 0 : i32
    return %arg1, %c0_i32, %c0_i32_0 : i32, i32, i32
  }
  func.func @transform_17(%arg0: i32, %arg1: i32) -> (i32, i32, i32) {
    %c0_i32 = arith.constant 0 : i32
    %c0_i32_0 = arith.constant 0 : i32
    %c0_i32_1 = arith.constant 0 : i32
    return %arg0, %c0_i32, %c0_i32_0 : i32, i32, i32
  }
}

</mosaic_0001>

<bundles_post_ra>
// kernel: vit_embedder_forward.5
= control target key start
LH: loop header
LB: loop body
LE: loop exit
PB: predicated region body
PF: predicated region fallthrough
CT: control target
= control target key end

     0   :  { %8 = vsyncpa [#allocation3], 0  ;;  %s521_s0 = inlined_call_operand.vmem [shape: f32[2,5,32], index: 0, kind: input, shape index: {}]   ;;  %s522_s1 = inlined_call_operand.vmem [shape: f32[1,32], index: 1, kind: input, shape index: {}]   ;;  %s523_s2 = inlined_call_operand.vmem [shape: f32[1,32], index: 2, kind: input, shape index: {}]   ;;  %s524_s3 = inlined_call_operand.hbm [shape: f32[2,1,32], index: 3, kind: output, shape index: {}]  }
   0x1   :  { %10 = vsyncpa [#allocation3 + $0x1], 0  ;;  %s412_s12 = smov 0   ;;  %s414_s13 = smov 0  }
   0x2   :  { %s416_s14 = smov 0   ;;  %s418_s15 = smov 0  }
   0x3 LB: > { %s433_s16 = sadd.s32 4294967295, %s389_s15   ;;  %s276_s17 = sadd.s32 4294967294, %s389_s15   ;;  %s389_s15 = sphi %s418_s15, %s530_s15   ;;  %s385_s14 = sphi %s416_s14, %s529_s14   ;;  %s381_s13 = sphi %s414_s13, %s528_s13   ;;  %s377_s12 = sphi %s412_s12, %s527_s12  }
   0x4   : > { %s437_s18 = sadd.s32 1, %s389_s15   ;;  %s91_s19 = sadd.s32 1, %s385_s14 }
   0x5   : > { %s88_s20 = ssub.s32 %s389_s15, %s437_s18  ;;  %p101_p0 = scmp.ne.s32.totalorder %s385_s14, %s381_s13 }
   0x6   : > { %p89_p1 = scmp.eq.s32.totalorder %s88_s20, 0  ;;  %p102_p2 = scmp.eq.s32.totalorder %s433_s16, 1 }
   0x7   : > { %p107_p3 = scmp.ne.s32.totalorder %s381_s13, %s377_s12  ;;  %p108_p4 = scmp.eq.s32.totalorder %s276_s17, 1 }
   0x8   : > { %s448_s21 = scalar_select %p89_p1, %s385_s14, %s91_s19  }
   0x9   : > { %p450_p5 = por %p102_p2, %p101_p0  ;;  %p454_p6 = por %p108_p4, %p107_p3 }
   0xa   : > { %p279_p7 = scmp.ge.s32.totalorder %s389_s15, 1  ;;  %p139_p8 = scmp.lt.s32.totalorder %s389_s15, 3 }
   0xc   : > { %p140_p9 = pnand %p279_p7, %p139_p8 }
   0xd   : > { %p161_p10 = scmp.lt.s32.totalorder (!%p140_p9), %s433_s16, 1  ;;  %vm168_vm0 = vcmask (!%p140_p9), 258048   ;;  %v281_v11 = vld [vmem:[%s522_s1] ss:$0 sm:$0xff] (!%p140_p9)  ;;  %s159_s6 = sand.u32 (!%p140_p9), 1, %s381_s13   ;;  %vm206_vm1 = vcmask (!%p140_p9), 253952  }
   0xe   : > { %143 = sbr.rel (%p140_p9) target bundleno = 370 (0x172), region = 32  ;;  %v282_v13 = vld [vmem:[%s523_s2] ss:$0 sm:$0xff] (!%p140_p9)  ;;  %s283_s7 = sshll.u32 (!%p140_p9), %s433_s16, 4 }
   0xf   : > { %s160_s8 = scalar_lea.vmem (!%p140_p9), [#allocation2], %s159_s6  ;;  %s479_s17 = scalar_lea.hbm (!%p140_p9), %s524_s3, %s283_s7 }
  0x10   : > { %s221_s9 = sshll.u32 (!%p140_p9), %s160_s8, 4  ;;  %s209_s19 = scalar_lea.sflag (!%p140_p9), [#allocation3], %s159_s6  ;;  %s481_s9 = int_to_ptr.vmem [resolvable:$true] %s221_s9 }
  0x11   : > { %s327_s20 = scalar_lea.vmem (!%p140_p9), %s481_s9, 16 }
  0x12   : > { %p328_p11 = scmp.ne.s32.totalorder (!%p140_p9), %s481_s9, %s327_s20 }
  0x14   : > { %p329_p12 = pnand (!%p140_p9), %p328_p11, %p450_p5 }
  0x15   : > { %s162_s24 = scalar_select %p161_p10, %s433_s16, 1 }
  0x16   : > { %p330_p13 = pneg %p329_p12  ;;  %s391_s16 = smov [#allocation2]  }
  0x17   : > { %s280_s25 = sshll.u32 %s162_s24, 3  ;;  %s331_s24 = sshll.u32 %s391_s16, 4  ;;  %s332_s24 = int_to_ptr.vmem [resolvable:$false] %s331_s24 }
  0x18   : > { %s164_s28 = scalar_lea.vmem %s521_s0, %s280_s25  ;;  %s333_s25 = scalar_lea.vmem %s332_s24, 32 }
  0x19   : > { %v165_v0 = vld [vmem:[%s164_s28] sm:$0x1f]  ;;  %p334_p0 = scmp.lt.s32.totalorder %s481_s9, %s332_s24  ;;  %p335_p1 = scmp.lt.s32.totalorder %s333_s25, %s327_s20 }
  0x1a   : > { %v169_v1 = vsel %vm168_vm0, %v165_v0, 0.0 }
  0x1b   : > { %170 = vadd.xlane.f32.xlu0 %v169_v1  ;;  %p336_p2 = por %p335_p1, %p334_p0 }
  0x1d   : > { %p337_p3 = pnand %p336_p2, %p330_p13 }
  0xa8   : > { %v171_v2 = vpop.xlane.xlu0 %170 }
  0xa9   : > { %v173_v3 = vmul.f32 0.03125, %v171_v2 }
  0xab   : > { %v174_v4 = vsub.f32 %v165_v0, %v173_v3 }
  0xad   : > { %v175_v5 = vmul.f32 %v174_v4, %v174_v4 }
  0xaf   : > { %v176_v6 = vsel %vm168_vm0, %v175_v5, 0.0 }
  0xb0   : > { %177 = vadd.xlane.f32.xlu0 %v176_v6 }
 0x13d   : > { %v178_v7 = vpop.xlane.xlu0 %177 }
 0x13e   : > { %v179_v8 = vmul.f32 0.03125, %v178_v7 }
 0x140   : > { %v180_v9 = vadd.f32 1e-12, %v179_v8 }
 0x142   : > { %325 = vrsqrt.f32 %v180_v9 }
 0x14c   : > { %v326_v10 = vpop.eup %325 }
 0x14d   : > { %v182_v12 = vmul.f32 %v326_v10, %v174_v4 }
 0x14f   : > { %v189_v14 = vmul.f32 %v281_v11, %v182_v12 }
 0x151   : > { %v196_v15 = vadd.f32 %v282_v13, %v189_v14 }
 0x153   : > { %v197_v16 = vsel %vm168_vm0, %v196_v15, 0.0 }
 0x154   : > { %v198_v17 = vrot.slane %v197_v16, 4 }
 0x156   : > { %v199_v18 = vadd.f32 %v198_v17, %v197_v16 }
 0x158   : > { %v200_v19 = vrot.slane %v199_v18, 2 }
 0x15a   : > { %v201_v20 = vadd.f32 %v200_v19, %v199_v18 }
 0x15c   : > { %v202_v21 = vrot.slane %v201_v20, 1 }
 0x15e   : > { %v203_v22 = vadd.f32 %v202_v21, %v201_v20 }
 0x160   : > { %v204_v23 = vsub.f32 %v203_v22, %v196_v15 }
 0x162   : > { %v205_v24 = vmul.f32 0.25, %v204_v23 }
 0x164   : > { %207 = vst.msk [vmem:[%s160_s8] sm:$0x1] %vm206_vm1, %v205_v24 }
 0x165   : > { %340 = shalt.err (!%p337_p3)
}
 0x166   : > { %s341_s26 = scalar_lea.hbm %s479_s17, 16  ;;  %s345_s29 = scalar_lea.hbm %s524_s3, 32 }
 0x167   : > { %p342_p4 = scmp.ne.s32.totalorder %s479_s17, %s341_s26  ;;  %p346_p9 = scmp.lt.u32.totalorder %s479_s17, %s524_s3 }
 0x168   : > { %p347_p10 = scmp.lt.u32.totalorder %s345_s29, %s341_s26  ;;  %p349_p12 = scmp.lt.u32.totalorder %s341_s26, %s479_s17 }
 0x169   : > { %p343_p7 = pnand %p342_p4, %p450_p5 }
 0x16a   : > { %p348_p11 = por %p347_p10, %p346_p9 }
 0x16b   : > { %p344_p8 = pneg %p343_p7 }
 0x16c   : > { %p350_p13 = por %p349_p12, %p348_p11 }
 0x16e   : > { %p351_p0 = pnand %p350_p13, %p344_p8 }
 0x170   : > { %354 = shalt.err (!%p351_p0)
}
 0x171   : > { %286 = dma.vmem_to_hbm [thread:$0]  (%p450_p5), %s481_s9, 16, %s479_s17, %s209_s19  }
 0x172 PF: > { %p292_p1 = scmp.ge.s32.totalorder %s389_s15, 2  ;;  %s233_s5 = sand.u32 1, %s377_s12  }
 0x173   : > { %s234_s6 = scalar_lea.sflag [#allocation3], %s233_s5 }
 0x174   : > { %p289_p2 = pnand %p292_p1, %p454_p6 }
 0x176   : > { %372 = dma.done.wait (!%p289_p2), %s234_s6, 16  }
 0x177   : > { %374 = vsyncadd (!%p289_p2), %s234_s6, 4294967280  ;;  %p13_p3 = scmp.ge.s32.totalorder %s437_s18, 4   ;;  %s527_s12 = smov %s381_s13 }
 0x178   : > { %s528_s13 = smov %s385_s14  ;;  %s529_s14 = smov %s448_s21 }
 0x179   : > { %s530_s15 = smov %s437_s18  ;;  %15 = sbr.rel (!%p13_p3) target bundleno = 3 (0x3), region = 67 }
 0x180   :  { %238 = vsyncpa [#allocation3], 1 }
 0x181   :  { %240 = vsyncpa [#allocation3 + $0x1], 1 }

// kernel: vit_embedder_forward.3
= control target key start
LH: loop header
LB: loop body
LE: loop exit
PB: predicated region body
PF: predicated region fallthrough
CT: control target
= control target key end

     0   :  { %s450_s12 = smov 0   ;;  %s513_s0 = inlined_call_operand.vmem [shape: f32[2,4,192], index: 0, kind: input, shape index: {}]   ;;  %s514_s1 = inlined_call_operand.vmem [shape: bf16[192,32], index: 1, kind: input, shape index: {}]   ;;  %s515_s2 = inlined_call_operand.vmem [shape: f32[1,5,32], index: 2, kind: input, shape index: {}]   ;;  %s516_s3 = inlined_call_operand.vmem [shape: f32[2,5,32], index: 3, kind: output, shape index: {}]  }
   0x1 LB: > { %s375_s13 = sadd.s32 4294967295, %s427_s12   ;;  %p379_p0 = scmp.ge.s32.totalorder %s427_s12, 1  ;;  %s427_s12 = sphi %s450_s12, %s13_s12  }
   0x2   : > { %p137_p1 = scmp.lt.s32.totalorder %s427_s12, 3 }
   0x4   : > { %p138_p2 = pnand %p379_p0, %p137_p1 }
   0x5   : > { %v408_v0 = vld [vmem:[%s514_s1] sm:$0xff] (!%p138_p2)   ;;  %v429_v1 = vmov (!%p138_p2), 0   ;;  %p160_p3 = scmp.lt.s32.totalorder (!%p138_p2), %s375_s13, 1  ;;  %v409_v2 = vld [vmem:[%s514_s1 + $0x8] sm:$0xff] (!%p138_p2)   ;;  %v410_v3 = vld [vmem:[%s514_s1 + $0x10] sm:$0xff] (!%p138_p2)   ;;  %vm201_vm0 = vcmask (!%p138_p2), 253952  }
   0x6   : > { %141 = sbr.rel (%p138_p2) target bundleno = 269 (0x10d), region = 32  ;;  %280 = vmatprep.subr.bf16.mxu0 (!%p138_p2), %v429_v1  ;;  %v411_v4 = vld [vmem:[%s514_s1 + $0x18] sm:$0xff] (!%p138_p2)   ;;  %v200_v6 = vld [vmem:[%s515_s2] sm:$0x1] (!%p138_p2)  ;;  %vm276_vm1 = vcmask (!%p138_p2), 523264   ;;  %v413_v10 = vld [vmem:[%s514_s1 + $0x28] sm:$0xff] (!%p138_p2)  }
   0x7   : > { %281 = vmatpush1.bf16.msra.mxu0 (!%p138_p2), %v408_v0  ;;  %v412_v8 = vld [vmem:[%s514_s1 + $0x20] sm:$0xff] (!%p138_p2)   ;;  %v414_v11 = vld [vmem:[%s514_s1 + $0x30] sm:$0xff] (!%p138_p2)   ;;  %v415_v12 = vld [vmem:[%s514_s1 + $0x38] sm:$0xff] (!%p138_p2)   ;;  %vm320_vm2 = vcmask (!%p138_p2), 257024  }
   0x8   : > { %282 = vmatprep.subr.bf16.mxu0 (!%p138_p2), %v429_v1  ;;  %v416_v13 = vld [vmem:[%s514_s1 + $0x40] sm:$0xff] (!%p138_p2)   ;;  %v417_v14 = vld [vmem:[%s514_s1 + $0x48] sm:$0xff] (!%p138_p2)   ;;  %v418_v15 = vld [vmem:[%s514_s1 + $0x50] sm:$0xff] (!%p138_p2)  }
   0x9   : > { %v419_v16 = vld [vmem:[%s514_s1 + $0x58] sm:$0xff] (!%p138_p2)   ;;  %v203_v18 = vld [vmem:[%s515_s2 + $0x1] sm:$0xf] (!%p138_p2) }
   0xb   : > { %283 = vmatpush1.bf16.msra.mxu0 (!%p138_p2), %v409_v2 }
   0xc   : > { %284 = vmatprep.subr.bf16.mxu0 (!%p138_p2), %v429_v1 }
   0xd   : > { %s518_s13 = smov (!%p160_p3, %s375_s13), 1 }
   0xe   : > { %s398_s20 = sshll.u32 %s518_s13, 3 }
   0xf   : > { %s164_s23 = scalar_lea.vmem %s513_s0, %s398_s20  ;;  %285 = vmatpush1.bf16.msra.mxu0 %v410_v3  ;;  %s476_s28 = scalar_lea.vmem %s516_s3, %s398_s20 }
  0x10   : > { %286 = vmatprep.subr.bf16.mxu0 %v429_v1  ;;  %v170_v5 = vld [vmem:[%s164_s23] sm:$0xff]  ;;  %202 = vst.msk [vmem:[%s476_s28] sm:$0x1] %vm201_vm0, %v200_v6 }
  0x11   : > { %v196_v7 = vcombine.high %v170_v5, %v170_v5  ;;  %v198_v17 = vpack.c.bf16 %v170_v5, %v170_v5 }
  0x13   : > { %287 = vmatpush1.bf16.msra.mxu0 %v411_v4  ;;  %v199_v9 = vpack.c.bf16 %v196_v7, %v196_v7 }
  0x14   : > { %288 = vmatprep.subr.bf16.mxu0 %v429_v1 }
  0x15   : > { %395 = vmatprep.mubr.msk.bf16.mxu0 %vm276_vm1, %v199_v9 }
  0x17   : > { %289 = vmatpush1.bf16.msra.mxu0 %v412_v8 }
  0x18   : > { %290 = vmatprep.subr.bf16.mxu0 %v429_v1 }
  0x1b   : > { %291 = vmatpush1.bf16.msra.mxu0 %v413_v10 }
  0x1c   : > { %292 = vmatprep.subr.bf16.mxu0 %v429_v1 }
  0x1f   : > { %293 = vmatpush1.bf16.msra.mxu0 %v414_v11 }
  0x20   : > { %294 = vmatprep.subr.bf16.mxu0 %v429_v1 }
  0x23   : > { %295 = vmatpush1.bf16.msra.mxu0 %v415_v12 }
  0x24   : > { %296 = vmatprep.subr.bf16.mxu0 %v429_v1 }
  0x27   : > { %297 = vmatpush1.bf16.msra.mxu0 %v416_v13 }
  0x28   : > { %298 = vmatprep.subr.bf16.mxu0 %v429_v1 }
  0x2b   : > { %299 = vmatpush1.bf16.msra.mxu0 %v417_v14 }
  0x2c   : > { %300 = vmatprep.subr.bf16.mxu0 %v429_v1 }
  0x2f   : > { %301 = vmatpush1.bf16.msra.mxu0 %v418_v15 }
  0x30   : > { %302 = vmatprep.subr.bf16.mxu0 %v429_v1 }
  0x33   : > { %303 = vmatpush1.bf16.msra.mxu0 %v419_v16 }
  0x36   : > { %313 = vmatmul.mubr.bf16.vlgmr.msra.gmra.mrb[0].mxu0 %v198_v17 }
 0x109   : > { %v314_v19 = vpop.f32.mrb[0].mxu0 }
 0x10a   : > { %v315_v20 = vadd.f32 %v314_v19, %v203_v18  ;;  %v316_v21 = vpop.f32.mrb[1].mxu0 }
 0x10b   : > { %v317_v22 = vpop.f32.mrb[2].mxu0 }
 0x10c   : > { %321 = vst.msk [vmem:[%s476_s28 + $0x1] sm:$0xf] %vm320_vm2, %v315_v20  ;;  %v318_v23 = vpop.f32.mrb[3].mxu0 }
 0x10d PF: > { %s13_s12 = sadd.s32 1, %s427_s12  }
 0x10e   : > { %p10_p4 = scmp.ge.s32.totalorder %s13_s12, 4  }
 0x110   :  { %12 = sbr.rel (!%p10_p4) target bundleno = 1 (0x1), region = 62 }

// kernel: vit_embedder_forward.4
= control target key start
LH: loop header
LB: loop body
LE: loop exit
PB: predicated region body
PF: predicated region fallthrough
CT: control target
= control target key end

     0   :  { %s2491_s24 = smov 0   ;;  %s2493_s25 = smov 0   ;;  %s2785_s0 = inlined_call_operand.vmem [shape: f32[2,5,32], index: 0, kind: input, shape index: {}]   ;;  %s2786_s1 = inlined_call_operand.vmem [shape: f32[2,1,32], index: 1, kind: input, shape index: {}]   ;;  %s2787_s2 = inlined_call_operand.vmem [shape: f32[2,1,32], index: 2, kind: input, shape index: {}]   ;;  %s2788_s3 = inlined_call_operand.vmem [shape: bf16[2,2,32,16], index: 3, kind: input, shape index: {}]   ;;  %s2789_s4 = inlined_call_operand.vmem [shape: f32[2,2,1,16], index: 4, kind: input, shape index: {}]   ;;  %s2790_s5 = inlined_call_operand.vmem [shape: bf16[2,2,32,16], index: 5, kind: input, shape index: {}]   ;;  %s2791_s6 = inlined_call_operand.vmem [shape: f32[2,2,1,16], index: 6, kind: input, shape index: {}]   ;;  %s2792_s7 = inlined_call_operand.vmem [shape: bf16[2,2,32,16], index: 7, kind: input, shape index: {}]   ;;  %s2793_s8 = inlined_call_operand.vmem [shape: f32[2,2,1,16], index: 8, kind: input, shape index: {}]   ;;  %s2794_s9 = inlined_call_operand.vmem [shape: bf16[2,2,16,32], index: 9, kind: input, shape index: {}]   ;;  %s2795_s10 = inlined_call_operand.vmem [shape: f32[2,1,32], index: 10, kind: input, shape index: {}]   ;;  %s2796_s11 = inlined_call_operand.vmem [shape: f32[2,1,32], index: 11, kind: input, shape index: {}]   ;;  %s2797_s12 = inlined_call_operand.vmem [shape: f32[2,1,32], index: 12, kind: input, shape index: {}]   ;;  %s2798_s13 = inlined_call_operand.vmem [shape: bf16[2,32,64], index: 13, kind: input, shape index: {}]   ;;  %s2799_s14 = inlined_call_operand.vmem [shape: f32[2,1,64], index: 14, kind: input, shape index: {}]   ;;  %s2800_s15 = inlined_call_operand.vmem [shape: bf16[2,64,32], index: 15, kind: input, shape index: {}]   ;;  %s2801_s16 = inlined_call_operand.vmem [shape: f32[2,1,32], index: 16, kind: input, shape index: {}]   ;;  %s2802_s17 = inlined_call_operand.vmem [shape: f32[2,5,32], index: 17, kind: output, shape index: {}]  }
   0x1   :  { %2809 = sst [smem:[#allocation11_spill]] %s2785_s0  ;;  %s2495_s26 = smov 0  }
   0x2   :  { %2810 = sst [smem:[#allocation12_spill]] %s2786_s1  ;;  %s2497_s27 = smov 0  }
   0x3   :  { %2811 = sst [smem:[#allocation13_spill]] %s2787_s2  ;;  %s2499_s28 = smov 0  }
   0x4   :  { %2812 = sst [smem:[#allocation14_spill]] %s2788_s3 }
   0x5   :  { %2813 = sst [smem:[#allocation15_spill]] %s2789_s4 }
   0x6   :  { %2814 = sst [smem:[#allocation16_spill]] %s2790_s5 }
   0x7   :  { %2815 = sst [smem:[#allocation17_spill]] %s2791_s6 }
   0x8   :  { %2816 = sst [smem:[#allocation18_spill]] %s2792_s7 }
   0x9   :  { %2817 = sst [smem:[#allocation19_spill]] %s2793_s8 }
   0xa   :  { %2818 = sst [smem:[#allocation20_spill]] %s2794_s9 }
   0xb   :  { %2819 = sst [smem:[#allocation21_spill]] %s2796_s11 }
   0xc   :  { %2820 = sst [smem:[#allocation22_spill]] %s2797_s12 }
   0xd   :  { %2821 = sst [smem:[#allocation23_spill]] %s2800_s15 }
   0xe   :  { %2822 = sst [smem:[#allocation24_spill]] %s2801_s16 }
   0xf   :  { %2823 = sst [smem:[#allocation25_spill]] %s2802_s17 }
  0x10 LB: > { %2824 = sst [smem:[#allocation3_spill]] %s2380_s24  ;;  %s36_s29 = sadd.s32 1, %s2388_s26  ;;  %s2396_s28 = sphi %s2499_s28, %s27_s28   ;;  %s2392_s27 = sphi %s2497_s27, %s2865_s27   ;;  %s2388_s26 = sphi %s2495_s26, %s2864_s26   ;;  %s2384_s25 = sphi %s2493_s25, %s2863_s25   ;;  %s2380_s24 = sphi %s2491_s24, %s2862_s24  }
  0x11   : > { %2825 = sst [smem:[#allocation4_spill]] %s2388_s26  ;;  %s39_s0 = sadd.s32 1, %s2392_s27 }
  0x12   : > { %2826 = sst [smem:[#allocation5_spill]] %s2392_s27  ;;  %p37_p0 = scmp.ge.s32.totalorder %s36_s29, 2 }
  0x13   : > { %2827 = sst [smem:[#allocation6_spill]] %s2396_s28  ;;  %p2045_p1 = scmp.ge.s32.totalorder %s2396_s28, 1 }
  0x14   : > { %p641_p2 = scmp.lt.s32.totalorder %s2396_s28, 5  ;;  %s2867_s29 = smov (%p37_p0, %s36_s29), 0 }
  0x15   : > { %2828 = sst [smem:[#allocation7_spill]] %s2867_s29  ;;  %s2869_s0 = smov (!%p37_p0, %s39_s0), %s2392_s27 }
  0x16   : > { %p642_p3 = pnand %p2045_p1, %p641_p2  ;;  %p41_p4 = scmp.ge.s32.totalorder %s2869_s0, 2 }
  0x18   : > { %s2871_s0 = smov (%p41_p4, %s2869_s0), 0  ;;  %645 = sbr.rel (%p642_p3) target bundleno = 3124 (0xc34), region = 88 }
  0x19   : > { %2829 = sst [smem:[#allocation8_spill]] %s2871_s0 }
  0x1f   : > { %p754_p5 = scmp.lt.s32.totalorder %s2384_s25, 1  ;;  %p758_p6 = scmp.lt.s32.totalorder %s2380_s24, 1 }
  0x20   : > { %s2830_s20 = sld [smem:[#allocation11_spill]]  ;;  %s2833_s3 = sld [smem:[#allocation14_spill]] }
  0x21   : > { %s2873_s25 = smov (!%p754_p5, %s2384_s25), 1  ;;  %s2834_s4 = sld [smem:[#allocation15_spill]] }
  0x22   : > { %s2525_s30 = scalar_select %p758_p6, %s2380_s24, 1 }
  0x23   : > { %s2046_s18 = sshll.u32 %s2873_s25, 3  ;;  %s2836_s5 = sld [smem:[#allocation16_spill]] }
  0x24   : > { %s2131_s24 = sshll.u32 %s2525_s30, 5  ;;  %s2049_s15 = sshll.u32 %s2525_s30, 1 }
  0x25   : > { %s2837_s6 = sld [smem:[#allocation17_spill]]  ;;  %s2838_s7 = sld [smem:[#allocation18_spill]] }
  0x26   : > { %s757_s21 = scalar_lea.vmem %s2830_s20, %s2046_s18  ;;  %s2542_s25 = scalar_lea.vmem %s2833_s3, %s2131_s24 }
  0x27   : > { %s2548_s20 = scalar_lea.vmem %s2834_s4, %s2049_s15  ;;  %s2839_s8 = sld [smem:[#allocation19_spill]] }
  0x28   : > { %2835 = sst [smem:[#allocation9_spill]] %s2548_s20  ;;  %s2134_s1 = sshll.u32 %s2525_s30, 4 }
  0x29   : > { %s2553_s23 = scalar_lea.vmem %s2836_s5, %s2131_s24  ;;  %s2840_s9 = sld [smem:[#allocation20_spill]] }
  0x2a   : > { %s2844_s26 = sld [smem:[#allocation23_spill]]  ;;  %s2845_s16 = sld [smem:[#allocation24_spill]] }
  0x2b   : > { %s2558_s28 = scalar_lea.vmem %s2837_s6, %s2049_s15  ;;  %s2563_s29 = scalar_lea.vmem %s2838_s7, %s2131_s24 }
  0x2c   : > { %s2846_s2 = sld [smem:[#allocation25_spill]] }
  0x2d   : > { %s2568_s19 = scalar_lea.vmem %s2839_s8, %s2049_s15  ;;  %s2591_s8 = scalar_lea.vmem %s2798_s13, %s2134_s1 }
  0x2f   : > { %s2574_s0 = scalar_lea.vmem %s2840_s9, %s2134_s1  ;;  %s812_s9 = scalar_lea.vmem %s2799_s14, %s2525_s30 }
  0x30   : > { %2841 = sst [smem:[#allocation10_spill]] %s2574_s0  ;;  %s2600_s27 = scalar_lea.vmem %s2844_s26, %s2131_s24 }
  0x31   : > { %s820_s11 = scalar_lea.vmem %s2845_s16, %s2525_s30  ;;  %s2847_s1 = sld [smem:[#allocation3_spill]] }
  0x32   : > { %s2609_s12 = scalar_lea.vmem %s2846_s2, %s2046_s18 }
  0x37   : > { %p2063_p7 = scmp.ne.s32.totalorder %s2847_s1, 0 }
  0x38   : > { %v830_v0 = vld [vmem:[%s757_s21] sm:$0x1f] (!%p2063_p7)  ;;  %vm831_vm0 = vcmask (!%p2063_p7), 258048  }
  0x39   : > { %829 = sbr.rel (%p2063_p7) target bundleno = 64 (0x40), region = 92  ;;  %832 = vst.msk [vmem:[#allocation2] sm:$0x1f] (!%p2063_p7), %vm831_vm0, %v830_v0 }
  0x40 PF: > { %v2612_v1 = vld [vmem:[#allocation2] sm:$0x1f]  ;;  %vm836_vm1 = vcmask 258048   ;;  %v2398_v10 = vmov 0.0   ;;  %v2324_v11 = vld [vmem:[%s2542_s25 + $0x8] sm:$0xff]   ;;  %vm2399_vm2 = vmmov 0  }
  0x41   : > { %v837_v2 = vsel %vm836_vm1, %v2612_v1, 0.0  ;;  %v2322_v8 = vld [vmem:[%s2542_s25] sm:$0xff]   ;;  %2175 = vmatprep.subr.bf16.mxu0 %v2398_v10  ;;  %2183 = vmatprep.subr.bf16.mxu1 %v2398_v10  ;;  %v2325_v12 = vld [vmem:[%s2553_s23 + $0x8] sm:$0xff]   ;;  %s2848_s21 = sld [smem:[#allocation12_spill]]  ;;  %s2850_s3 = sld [smem:[#allocation13_spill]]  ;;  %vm889_vm3 = vcmask 261120  }
  0x42   : > { %838 = vadd.xlane.f32.xlu0 %v837_v2  ;;  %v2323_v9 = vld [vmem:[%s2553_s23] sm:$0xff]   ;;  %2176 = vmatpush3.bf16.msra.mxu0 %v2322_v8  ;;  %v2327_v24 = vld [vmem:[%s2563_s29 + $0x8] sm:$0xff]   ;;  %s2852_s4 = sld [smem:[#allocation9_spill]]  ;;  %vm1061_vm4 = vcmask 130048   ;;  %vm1127_vm5 = vcmask 1041408   ;;  %vm1128_vm6 = vcmask 1042432  }
  0x43   : > { %2184 = vmatpush3.bf16.msra.mxu1 %v2323_v9  ;;  %2177 = vmatprep.subr.bf16.mxu0 %v2398_v10  ;;  %v2326_v22 = vld [vmem:[%s2563_s29] sm:$0xff]   ;;  %v2400_v40 = vmov 65535   ;;  %v2328_v47 = vld [vmem:[%s2542_s25 + $0x10] sm:$0xff]   ;;  %v2329_v52 = vld [vmem:[%s2542_s25 + $0x18] sm:$0xff]   ;;  %vm1109_vm7 = vcmask 36864   ;;  %vm1123_vm8 = vcmask 39936  }
  0x44   : > { %2185 = vmatprep.subr.bf16.mxu1 %v2398_v10  ;;  %2179 = vmatprep.mubr.msk.bf16.mxu0 %vm2399_vm2, %v2398_v10  ;;  %v2070_v25 = vld [vmem:[%s2558_s28] ss:$0 sm:$0xff]  ;;  %v1129_v41 = vsel %vm1127_vm5, 4294967295, %v2400_v40  ;;  %v2330_v53 = vld [vmem:[%s2563_s29 + $0x10] sm:$0xff]   ;;  %v2331_v54 = vld [vmem:[%s2563_s29 + $0x18] sm:$0xff]   ;;  %s2853_s29 = sld [smem:[#allocation10_spill]] }
  0x45   : > { %2187 = vmatprep.mubr.msk.bf16.mxu1 %vm2399_vm2, %v2398_v10  ;;  %v2074_v38 = vld [vmem:[%s2568_s19] ss:$0 sm:$0xff]  ;;  %v1130_v45 = vsel %vm1128_vm6, %v1129_v41, 0  ;;  %v2103_v2 = vld [vmem:[%s2568_s19 + $0x1] ss:$0 sm:$0xff]  ;;  %s2855_s5 = sld [smem:[#allocation21_spill]] }
  0x46   : > { %2178 = vmatpush3.bf16.msra.mxu0 %v2324_v11  ;;  %s2857_s7 = sld [smem:[#allocation22_spill]]  ;;  %vm1747_vm10 = vcmask 523264   ;;  %s2860_s18 = sld [smem:[#allocation3_spill]] }
  0x47   : > { %2186 = vmatpush3.bf16.msra.mxu1 %v2325_v12  ;;  %2191 = vmatprep.subr.bf16.mxu0 %v2398_v10  ;;  %s2849_s0 = scalar_lea.vmem %s2848_s21, %s2525_s30  ;;  %s2851_s15 = scalar_lea.vmem %s2850_s3, %s2525_s30 }
  0x48   : > { %2199 = vmatprep.subr.bf16.mxu1 %v2398_v10  ;;  %v2064_v17 = vld [vmem:[%s2849_s0] ss:$0 sm:$0xff] }
  0x49   : > { %v2065_v19 = vld [vmem:[%s2851_s15] ss:$0 sm:$0xff] }
  0x4a   : > { %v2066_v36 = vld [vmem:[%s2852_s4] ss:$0 sm:$0xff] }
  0x4b   : > { %s2856_s26 = scalar_lea.vmem %s2855_s5, %s2525_s30 }
  0x4c   : > { %s2858_s17 = scalar_lea.vmem %s2857_s7, %s2525_s30  ;;  %p2128_p8 = scmp.ne.s32.totalorder %s2860_s18, 1 }
  0xcf   : > { %v839_v3 = vpop.xlane.xlu0 %838 }
  0xd0   : > { %v841_v4 = vmul.f32 0.03125, %v839_v3 }
  0xd2   : > { %v842_v5 = vsub.f32 %v2612_v1, %v841_v4 }
  0xd4   : > { %v843_v6 = vmul.f32 %v842_v5, %v842_v5 }
  0xd6   : > { %v844_v7 = vsel %vm836_vm1, %v843_v6, 0.0 }
  0xd7   : > { %845 = vadd.xlane.f32.xlu0 %v844_v7 }
 0x164   : > { %v846_v13 = vpop.xlane.xlu0 %845 }
 0x165   : > { %v847_v14 = vmul.f32 0.03125, %v846_v13 }
 0x167   : > { %v848_v15 = vadd.f32 1e-12, %v847_v14 }
 0x169   : > { %2342 = vrsqrt.f32 %v848_v15 }
 0x173   : > { %v2343_v16 = vpop.eup %2342 }
 0x174   : > { %v850_v18 = vmul.f32 %v2343_v16, %v842_v5 }
 0x176   : > { %v857_v20 = vmul.f32 %v2064_v17, %v850_v18 }
 0x178   : > { %v864_v21 = vadd.f32 %v2065_v19, %v857_v20  ;;  %v2332_v19 = vld [vmem:[%s2553_s23 + $0x10] sm:$0xff]  }
 0x17a   : > { %v2643_v23 = vpack.c.bf16 %v864_v21, %v864_v21  ;;  %v2333_v21 = vld [vmem:[%s2553_s23 + $0x18] sm:$0xff]   ;;  %s2854_s23 = scalar_lea.vmem %s2795_s10, %s2525_s30 }
 0x17c   : > { %2180 = vmatmul.mubr.msk.bf16.vlgmr.msra.gmra.mrb[0].mxu0 %vm889_vm3, %v2643_v23  ;;  %2188 = vmatmul.mubr.msk.bf16.vlgmr.msra.gmra.mrb[0].mxu1 %vm889_vm3, %v2643_v23 }
 0x17d   : > { %2192 = vmatpush3.bf16.msra.mxu0 %v2326_v22  ;;  %2195 = vmatprep.mubr.msk.bf16.mxu0 %vm2399_vm2, %v2398_v10 }
 0x17e   : > { %2193 = vmatprep.subr.bf16.mxu0 %v2398_v10  ;;  %2201 = vmatprep.mubr.msk.bf16.mxu1 %vm2399_vm2, %v2398_v10 }
 0x181   : > { %2194 = vmatpush3.bf16.msra.mxu0 %v2327_v24 }
 0x182   : > { %2205 = vmatprep.subr.bf16.mxu0 %v2398_v10 }
 0x184   : > { %2196 = vmatmul.mubr.msk.bf16.vlgmr.msra.gmra.mrb[4].mxu0 %vm889_vm3, %v2643_v23 }
 0x185   : > { %2207 = vmatprep.mubr.msk.bf16.mxu0 %vm2399_vm2, %v2398_v10 }
 0x24f   : > { %v927_v26 = vpop.f32.mrb[0].mxu0  ;;  %v990_v27 = vpop.f32.mrb[0].mxu1 }
 0x250   : > { %v991_v28 = vadd.f32 %v2070_v25, %v990_v27  ;;  %v2181_v29 = vpop.f32.mrb[1].mxu0  ;;  %v2189_v30 = vpop.f32.mrb[1].mxu1  ;;  %v928_v39 = vadd.f32 %v2066_v36, %v927_v26  ;;  %v2094_v27 = vld [vmem:[%s2558_s28 + $0x1] ss:$0 sm:$0xff] }
 0x251   : > { %v930_v31 = vpop.f32.mrb[2].mxu0  ;;  %v993_v32 = vpop.f32.mrb[2].mxu1 }
 0x252   : > { %v1060_v33 = vpack.c.bf16 %v991_v28, %v991_v28  ;;  %v2182_v34 = vpop.f32.mrb[3].mxu0  ;;  %v2190_v35 = vpop.f32.mrb[3].mxu1  ;;  %v1059_v48 = vpack.c.bf16 %v928_v39, %v928_v39 }
 0x253   : > { %v2085_v34 = vld [vmem:[%s2852_s4 + $0x1] ss:$0 sm:$0xff] }
 0x254   : > { %v1066_v37 = vsel %vm1061_vm4, %v1060_v33, 0 }
 0x255   : > { %2200 = vmatpush3.bf16.xpose.msra.mxu1 %v1066_v37 }
 0x256   : > { %2211 = vmatprep.subr.bf16.mxu1 %v2398_v10 }
 0x257   : > { %v1053_v42 = vpop.f32.mrb[4].mxu0 }
 0x258   : > { %v1054_v43 = vadd.f32 %v2074_v38, %v1053_v42  ;;  %v2197_v44 = vpop.f32.mrb[5].mxu0 }
 0x259   : > { %v1056_v46 = vpop.f32.mrb[6].mxu0 }
 0x25a   : > { %v1122_v49 = vpack.c.bf16 %v1054_v43, %v1054_v43  ;;  %v2198_v50 = vpop.f32.mrb[7].mxu0 }
 0x25c   : > { %v1132_v51 = vand.u32 %v1130_v45, %v1122_v49  ;;  %2202 = vmatmul.mubr.msk.bf16.vlgmr.msra.gmra.mrb[4].mxu1 %vm1061_vm4, %v1059_v48  ;;  %v2335_v48 = vld [vmem:[%s2853_s29 + $0x8] sm:$0xff]  }
 0x25d   : > { %2212 = vmatpush3.bf16.msra.mxu1 %v2328_v47  ;;  %2215 = vmatprep.mubr.msk.bf16.mxu1 %vm2399_vm2, %v2398_v10 }
 0x25e   : > { %2206 = vmatpush3.bf16.msra.mxu0 %v1132_v51  ;;  %2213 = vmatprep.subr.bf16.mxu1 %v2398_v10 }
 0x25f   : > { %2219 = vmatprep.subr.bf16.mxu0 %v2398_v10 }
 0x261   : > { %2214 = vmatpush3.bf16.msra.mxu1 %v2329_v52  ;;  %v2334_v52 = vld [vmem:[%s2853_s29] sm:$0xff]  }
 0x262   : > { %2227 = vmatprep.subr.bf16.mxu1 %v2398_v10 }
 0x264   : > { %2216 = vmatmul.mubr.msk.bf16.vlgmr.msra.gmra.mrb[8].mxu1 %vm889_vm3, %v2643_v23 }
 0x265   : > { %2228 = vmatpush3.bf16.msra.mxu1 %v2330_v53  ;;  %2231 = vmatprep.mubr.msk.bf16.mxu1 %vm2399_vm2, %v2398_v10 }
 0x266   : > { %2229 = vmatprep.subr.bf16.mxu1 %v2398_v10 }
 0x269   : > { %2230 = vmatpush3.bf16.msra.mxu1 %v2331_v54 }
 0x26a   : > { %2241 = vmatprep.subr.bf16.mxu1 %v2398_v10 }
 0x26c   : > { %2232 = vmatmul.mubr.msk.bf16.vlgmr.msra.gmra.mrb[12].mxu1 %vm889_vm3, %v2643_v23 }
 0x26d   : > { %2243 = vmatprep.mubr.msk.bf16.mxu1 %vm2399_vm2, %v2398_v10 }
 0x32f   : > { %v1102_v55 = vpop.f32.mrb[4].mxu1 }
 0x330   : > { %v1108_v56 = vmul.f32 0.25, %v1102_v55  ;;  %v2203_v57 = vpop.f32.mrb[5].mxu1 }
 0x331   : > { %v1105_v58 = vpop.f32.mrb[6].mxu1 }
 0x332   : > { %v2204_v59 = vpop.f32.mrb[7].mxu1  ;;  %v1110_v60 = vsel %vm1109_vm7, %v1108_v56, -inf }
 0x333   : > { %1111 = vmax.xlane.f32.xlu1 %v1110_v60 }
 0x337   : > { %v1236_v61 = vpop.f32.mrb[8].mxu1 }
 0x338   : > { %v2217_v62 = vpop.f32.mrb[9].mxu1  ;;  %v1237_v36 = vadd.f32 %v2085_v34, %v1236_v61 }
 0x339   : > { %v1239_v63 = vpop.f32.mrb[10].mxu1 }
 0x33a   : > { %v2218_v0 = vpop.f32.mrb[11].mxu1 }
 0x33f   : > { %v1366_v3 = vpop.f32.mrb[12].mxu1 }
 0x340   : > { %v1367_v4 = vadd.f32 %v2103_v2, %v1366_v3  ;;  %v2233_v5 = vpop.f32.mrb[13].mxu1 }
 0x341   : > { %v1369_v6 = vpop.f32.mrb[14].mxu1 }
 0x342   : > { %v1433_v7 = vpack.c.bf16 %v1367_v4, %v1367_v4  ;;  %v2234_v8 = vpop.f32.mrb[15].mxu1  ;;  %v2115_v4 = vld [vmem:[%s2854_s23] ss:$0 sm:$0xff] }
 0x344   : > { %v1438_v9 = vand.u32 %v1433_v7, %v1130_v45 }
 0x346   : > { %2242 = vmatpush3.bf16.msra.mxu1 %v1438_v9 }
 0x347   : > { %2253 = vmatprep.subr.bf16.mxu1 %v2398_v10 }
 0x3c0   : > { %v1112_v11 = vpop.xlane.xlu1 %1111 }
 0x3c1   : > { %v1113_v12 = vsub.f32 %v1108_v56, %v1112_v11 }
 0x3c3   : > { %v1114_v13 = vmul.f32 1.442695, %v1113_v12 }
 0x3c5   : > { %2344 = vpow2.f32 %v1114_v13 }
 0x3cf   : > { %v2345_v14 = vpop.eup %2344 }
 0x3d0   : > { %v1116_v15 = vsel %vm1109_vm7, %v2345_v14, 0.0 }
 0x3d1   : > { %1117 = vadd.xlane.f32.xlu1 %v1116_v15 }
 0x45e   : > { %v1118_v16 = vpop.xlane.xlu1 %1117 }
 0x45f   : > { %2346 = vrcp.f32 %v1118_v16  ;;  %v2336_v16 = vld [vmem:[%s2591_s8] sm:$0xff]  }
 0x469   : > { %v2347_v17 = vpop.eup %2346 }
 0x46a   : > { %v1120_v18 = vmul.f32 %v2347_v17, %v2345_v14 }
 0x46c   : > { %v1121_v20 = vpack.c.bf16 %v1120_v18, %v1120_v18 }
 0x46e   : > { %2208 = vmatmul.mubr.msk.bf16.vlgmr.msra.gmra.mrb[8].mxu0 %vm1123_vm8, %v1121_v20 }
 0x46f   : > { %2220 = vmatpush3.bf16.msra.mxu0 %v2332_v19  ;;  %2223 = vmatprep.mubr.msk.bf16.mxu0 %vm2399_vm2, %v2398_v10 }
 0x470   : > { %2221 = vmatprep.subr.bf16.mxu0 %v2398_v10 }
 0x473   : > { %2222 = vmatpush3.bf16.msra.mxu0 %v2333_v21  ;;  %v2116_v21 = vld [vmem:[%s2856_s26] ss:$0 sm:$0xff] }
 0x474   : > { %2235 = vmatprep.subr.bf16.mxu0 %v2398_v10 }
 0x476   : > { %2224 = vmatmul.mubr.msk.bf16.vlgmr.msra.gmra.mrb[12].mxu0 %vm889_vm3, %v2643_v23  ;;  %v1372_v23 = vpack.c.bf16 %v1237_v36, %v1237_v36 }
 0x477   : > { %2237 = vmatprep.mubr.msk.bf16.mxu0 %vm2399_vm2, %v2398_v10 }
 0x541   : > { %v1168_v22 = vpop.f32.mrb[8].mxu0 }
 0x542   : > { %v2209_v24 = vpop.f32.mrb[9].mxu0  ;;  %v1176_v54 = vpack.c.bf16 %v1168_v22, %v1168_v22 }
 0x543   : > { %v1171_v25 = vpop.f32.mrb[10].mxu0  ;;  %v2117_v24 = vld [vmem:[%s2858_s17] ss:$0 sm:$0xff] }
 0x544   : > { %v2210_v26 = vpop.f32.mrb[11].mxu0 }
 0x549   : > { %v1301_v28 = vpop.f32.mrb[12].mxu0 }
 0x54a   : > { %v1302_v29 = vadd.f32 %v2094_v27, %v1301_v28  ;;  %v2225_v30 = vpop.f32.mrb[13].mxu0  ;;  %v2338_v28 = vld [vmem:[%s2600_s27] sm:$0xff]  }
 0x54b   : > { %v1304_v31 = vpop.f32.mrb[14].mxu0  ;;  %v2340_v30 = vld [vmem:[%s2600_s27 + $0x10] sm:$0xff]  }
 0x54c   : > { %v1373_v32 = vpack.c.bf16 %v1302_v29, %v1302_v29  ;;  %v2226_v33 = vpop.f32.mrb[15].mxu0  ;;  %v2339_v29 = vld [vmem:[%s2600_s27 + $0x8] sm:$0xff]   ;;  %v2341_v31 = vld [vmem:[%s2600_s27 + $0x18] sm:$0xff]  }
 0x54e   : > { %v1378_v35 = vsel %vm1061_vm4, %v1373_v32, 0  ;;  %v2118_v32 = vld [vmem:[%s812_s9] ss:$0 sm:$0xff] }
 0x54f   : > { %2236 = vmatpush3.bf16.xpose.msra.mxu0 %v1378_v35 }
 0x550   : > { %2247 = vmatprep.subr.bf16.mxu0 %v2398_v10 }
 0x556   : > { %2238 = vmatmul.mubr.msk.bf16.vlgmr.msra.gmra.mrb[16].mxu0 %vm1061_vm4, %v1372_v23 }
 0x557   : > { %2249 = vmatprep.mubr.msk.bf16.mxu0 %vm2399_vm2, %v2398_v10  ;;  %2248 = vmatpush3.bf16.msra.mxu0 %v2335_v48 }
 0x558   : > { %2259 = vmatprep.subr.bf16.mxu0 %v2398_v10 }
 0x629   : > { %v1414_v37 = vpop.f32.mrb[16].mxu0 }
 0x62a   : > { %v1420_v38 = vmul.f32 0.25, %v1414_v37  ;;  %v2239_v39 = vpop.f32.mrb[17].mxu0 }
 0x62b   : > { %v1417_v40 = vpop.f32.mrb[18].mxu0 }
 0x62c   : > { %v2240_v41 = vpop.f32.mrb[19].mxu0  ;;  %v1421_v42 = vsel %vm1109_vm7, %v1420_v38, -inf }
 0x62d   : > { %1422 = vmax.xlane.f32.xlu0 %v1421_v42 }
 0x6ba   : > { %v1423_v43 = vpop.xlane.xlu0 %1422 }
 0x6bb   : > { %v1424_v44 = vsub.f32 %v1420_v38, %v1423_v43 }
 0x6bd   : > { %v1425_v45 = vmul.f32 1.442695, %v1424_v44 }
 0x6bf   : > { %2348 = vpow2.f32 %v1425_v45 }
 0x6c9   : > { %v2349_v46 = vpop.eup %2348 }
 0x6ca   : > { %v1427_v47 = vsel %vm1109_vm7, %v2349_v46, 0.0 }
 0x6cb   : > { %1428 = vadd.xlane.f32.xlu1 %v1427_v47 }
 0x758   : > { %v1429_v49 = vpop.xlane.xlu1 %1428 }
 0x759   : > { %2350 = vrcp.f32 %v1429_v49 }
 0x763   : > { %v2351_v50 = vpop.eup %2350 }
 0x764   : > { %v1431_v51 = vmul.f32 %v2351_v50, %v2349_v46 }
 0x766   : > { %v1432_v53 = vpack.c.bf16 %v1431_v51, %v1431_v51 }
 0x768   : > { %2244 = vmatmul.mubr.msk.bf16.vlgmr.msra.gmra.mrb[16].mxu1 %vm1123_vm8, %v1432_v53 }
 0x769   : > { %2254 = vmatpush3.bf16.msra.mxu1 %v2334_v52  ;;  %2255 = vmatprep.mubr.msk.bf16.mxu1 %vm2399_vm2, %v2398_v10 }
 0x76a   : > { %2267 = vmatprep.subr.bf16.mxu1 %v2398_v10 }
 0x770   : > { %2256 = vmatmul.mubr.msk.bf16.vlgmr.msra.gmra.mrb[20].mxu1 %vm1061_vm4, %v1176_v54 }
 0x771   : > { %2275 = vmatprep.mubr.msk.bf16.mxu1 %vm2399_vm2, %v2398_v10  ;;  %2268 = vmatpush3.bf16.msra.mxu1 %v2338_v28 }
 0x772   : > { %2269 = vmatprep.subr.bf16.mxu1 %v2398_v10 }
 0x775   : > { %2270 = vmatpush3.bf16.msra.mxu1 %v2339_v29 }
 0x776   : > { %2271 = vmatprep.subr.bf16.mxu1 %v2398_v10 }
 0x779   : > { %2272 = vmatpush3.bf16.msra.mxu1 %v2340_v30 }
 0x77a   : > { %2273 = vmatprep.subr.bf16.mxu1 %v2398_v10 }
 0x77d   : > { %2274 = vmatpush3.bf16.msra.mxu1 %v2341_v31 }
 0x83b   : > { %v1474_v55 = vpop.f32.mrb[16].mxu1 }
 0x83c   : > { %v1483_v56 = vpack.c.bf16 %v1474_v55, %v1474_v55  ;;  %v2245_v57 = vpop.f32.mrb[17].mxu1 }
 0x83d   : > { %v1477_v58 = vpop.f32.mrb[18].mxu1 }
 0x83e   : > { %v2246_v59 = vpop.f32.mrb[19].mxu1  ;;  %2250 = vmatmul.mubr.msk.bf16.vlgmr.msra.gmra.mrb[20].mxu0 %vm1061_vm4, %v1483_v56 }
 0x83f   : > { %2263 = vmatprep.mubr.msk.bf16.mxu0 %vm2399_vm2, %v2398_v10  ;;  %2260 = vmatpush3.bf16.msra.mxu0 %v2336_v16 }
 0x840   : > { %2261 = vmatprep.subr.bf16.mxu0 %v2398_v10 }
 0x843   : > { %v1576_v60 = vpop.f32.mrb[20].mxu1 }
 0x844   : > { %v2257_v61 = vpop.f32.mrb[21].mxu1 }
 0x845   : > { %v1579_v62 = vpop.f32.mrb[22].mxu1 }
 0x846   : > { %v2258_v63 = vpop.f32.mrb[23].mxu1 }
 0x847   : > { %v2127_v63 = vld [vmem:[%s820_s11] ss:$0 sm:$0xff] }
 0x911   : > { %v1527_v0 = vpop.f32.mrb[20].mxu0 }
 0x912   : > { %v1577_v2 = vadd.f32 %v1576_v60, %v1527_v0  ;;  %v2251_v3 = vpop.f32.mrb[21].mxu0 }
 0x913   : > { %v1530_v5 = vpop.f32.mrb[22].mxu0 }
 0x914   : > { %v1582_v6 = vadd.f32 %v1577_v2, %v2612_v1  ;;  %v2252_v7 = vpop.f32.mrb[23].mxu0  ;;  %v2337_v1 = vld [vmem:[%s2591_s8 + $0x8] sm:$0xff]  }
 0x915   : > { %2262 = vmatpush3.bf16.msra.mxu0 %v2337_v1 }
 0x916   : > { %v2728_v8 = vadd.f32 %v2115_v4, %v1582_v6 }
 0x918   : > { %v1593_v9 = vsel %vm836_vm1, %v2728_v8, 0.0 }
 0x919   : > { %1594 = vadd.xlane.f32.xlu0 %v1593_v9 }
 0x9a6   : > { %v1595_v11 = vpop.xlane.xlu0 %1594 }
 0x9a7   : > { %v1596_v12 = vmul.f32 0.03125, %v1595_v11 }
 0x9a9   : > { %v1597_v13 = vsub.f32 %v2728_v8, %v1596_v12 }
 0x9ab   : > { %v1598_v14 = vmul.f32 %v1597_v13, %v1597_v13 }
 0x9ad   : > { %v1599_v15 = vsel %vm836_vm1, %v1598_v14, 0.0 }
 0x9ae   : > { %1600 = vadd.xlane.f32.xlu1 %v1599_v15 }
 0xa3b   : > { %v1601_v17 = vpop.xlane.xlu1 %1600 }
 0xa3c   : > { %v1602_v18 = vmul.f32 0.03125, %v1601_v17 }
 0xa3e   : > { %v1603_v19 = vadd.f32 1e-12, %v1602_v18 }
 0xa40   : > { %2352 = vrsqrt.f32 %v1603_v19 }
 0xa4a   : > { %v2353_v20 = vpop.eup %2352 }
 0xa4b   : > { %v1605_v22 = vmul.f32 %v2353_v20, %v1597_v13 }
 0xa4d   : > { %v1612_v25 = vmul.f32 %v2116_v21, %v1605_v22 }
 0xa4f   : > { %v1619_v26 = vadd.f32 %v2117_v24, %v1612_v25 }
 0xa51   : > { %v1624_v27 = vpack.c.bf16 %v1619_v26, %v1619_v26 }
 0xa53   : > { %2264 = vmatmul.mubr.msk.bf16.vlgmr.msra.gmra.mrb[24].mxu0 %vm889_vm3, %v1624_v27 }
 0xb26   : > { %v1681_v33 = vpop.f32.mrb[24].mxu0 }
 0xb27   : > { %v1682_v34 = vadd.f32 %v2118_v32, %v1681_v33  ;;  %v2265_v35 = vpop.f32.mrb[25].mxu0 }
 0xb28   : > { %v1684_v36 = vpop.f32.mrb[26].mxu0 }
 0xb29   : > { %v1688_v23 = vmul.f32 0.70710677, %v1682_v34  ;;  %v2266_v37 = vpop.f32.mrb[27].mxu0  ;;  %v1687_v58 = vmul.f32 0.5, %v1682_v34 }
 0xb2b   : > { %v1689_v38 = vand.u32 2147483647, %v1688_v23  ;;  %vm1709_vm9 = vcmp.ge.f32.partialorder %v1688_v23, 0.0 }
 0xb2d   : > { %v1690_v39 = vmul.f32 0.3275911, %v1689_v38  ;;  %v1703_v41 = vsub.f32 0.0, %v1689_v38 }
 0xb2f   : > { %v1691_v40 = vadd.f32 1.0, %v1690_v39  ;;  %v1704_v10 = vmul.f32 %v1703_v41, %v1689_v38 }
 0xb31   : > { %2354 = vrcp.f32 %v1691_v40  ;;  %v1705_v45 = vmul.f32 1.442695, %v1704_v10 }
 0xb33   : > { %2356 = vpow2.f32 %v1705_v45 }
 0xb3b   : > { %v2355_v42 = vpop.eup %2354 }
 0xb3c   : > { %v1694_v43 = vmul.f32 1.0614054, %v2355_v42 }
 0xb3d   : > { %v2357_v53 = vpop.eup %2356 }
 0xb3e   : > { %v1695_v44 = vadd.f32 -1.4531521, %v1694_v43 }
 0xb40   : > { %v1696_v46 = vmul.f32 %v2355_v42, %v1695_v44 }
 0xb42   : > { %v1697_v47 = vadd.f32 1.4214138, %v1696_v46 }
 0xb44   : > { %v1698_v48 = vmul.f32 %v2355_v42, %v1697_v47 }
 0xb46   : > { %v1699_v49 = vadd.f32 -0.28449672, %v1698_v48 }
 0xb48   : > { %v1700_v50 = vmul.f32 %v2355_v42, %v1699_v49 }
 0xb4a   : > { %v1701_v51 = vadd.f32 0.2548296, %v1700_v50 }
 0xb4c   : > { %v1702_v52 = vmul.f32 %v2355_v42, %v1701_v51 }
 0xb4e   : > { %v1707_v54 = vmul.f32 %v2357_v53, %v1702_v52 }
 0xb50   : > { %v1708_v55 = vsub.f32 1.0, %v1707_v54 }
 0xb52   : > { %v1710_v56 = vsub.f32 0.0, %v1708_v55 }
 0xb54   : > { %v1711_v57 = vsel %vm1709_vm9, %v1708_v55, %v1710_v56 }
 0xb55   : > { %v1712_v59 = vadd.f32 1.0, %v1711_v57 }
 0xb57   : > { %v1713_v60 = vmul.f32 %v1712_v59, %v1687_v58 }
 0xb59   : > { %v1722_v61 = vpack.c.bf16 %v1713_v60, %v1713_v60 }
 0xb5b   : > { %2276 = vmatmul.mubr.msk.bf16.vlgmr.msra.gmra.mrb[24].mxu1 %vm1747_vm10, %v1722_v61 }
 0xc2d   : > { %1804 = sbr.rel (%p2128_p8) target bundleno = 3124 (0xc34), region = 96 }
 0xc2e   : > { %v1785_v62 = vpop.f32.mrb[24].mxu1 }
 0xc2f   : > { %v1791_v0 = vadd.f32 %v1785_v62, %v2728_v8  ;;  %v2277_v2 = vpop.f32.mrb[25].mxu1 }
 0xc30   : > { %v1788_v3 = vpop.f32.mrb[26].mxu1 }
 0xc31   : > { %v1799_v4 = vadd.f32 %v2127_v63, %v1791_v0  ;;  %v2278_v5 = vpop.f32.mrb[27].mxu1 }
 0xc33   : > { %1800 = vst.msk [vmem:[#allocation2] sm:$0x1f] %vm836_vm1, %v1799_v4  ;;  %1805 = vst.msk [vmem:[%s2609_s12] sm:$0x1f] (!%p2128_p8), %vm836_vm1, %v1799_v4 }
 0xc34 PF: > { %s2861_s21 = sld [smem:[#allocation6_spill]]  ;;  %s2862_s24 = sld [smem:[#allocation4_spill]] }
 0xc35   : > { %s2863_s25 = sld [smem:[#allocation5_spill]]  ;;  %s2864_s26 = sld [smem:[#allocation7_spill]] }
 0xc36   : > { %s2865_s27 = sld [smem:[#allocation8_spill]] }
 0xc3a   : > { %s27_s28 = sadd.s32 1, %s2861_s21  }
 0xc3b   : > { %p24_p9 = scmp.ge.s32.totalorder %s27_s28, 6  }
 0xc3d   :  { %26 = sbr.rel (!%p24_p9) target bundleno = 16 (0x10), region = 181 }

</bundles_post_ra>
